<compile_context>
chip_gen: v7x
topology: tpu7x:2x2x1
jax: 0.10.0
libtpu: 0.0.40
codegen_flags: <defaults>
</compile_context>

<pallas_src>
import math

import jax
import jax.numpy as jnp
from jax.experimental import pallas as pl
from jax.experimental.pallas import tpu as pltpu


# ----------------------------------------------------------------------------
# Packed-parameter layout (single flat f32 SMEM array, static offsets)
# ----------------------------------------------------------------------------
_PARAM_SIZES = (
    ("w1", 18), ("b1", 1), ("alpha", 1),
    ("w2", 9), ("b2", 1),
    ("pa1_w", 25), ("pa1_b", 1),
    ("pa2_w", 9), ("pa2_b", 1),
    ("pa3_w", 3), ("pa3_b", 3),
    ("w3", 9), ("b3", 1),
)
OFF = {}
_o = 0
for _name, _n in _PARAM_SIZES:
    OFF[_name] = _o
    _o += _n
N_PARAMS = _o  # 82 scalars total


def pack_params(params):
    """Concatenate the 13 parameter arrays (in _PARAM_SIZES order) into one
    flat f32 vector for SMEM."""
    flat = jnp.concatenate([p.reshape(-1).astype(jnp.float32) for p in params])
    assert flat.shape == (N_PARAMS,), flat.shape
    return flat


# ----------------------------------------------------------------------------
# Kernel factory: one lane-dense block = `ipb` images of shape (H, W) laid
# side by side along the lane axis -> block shape (H, L) with L = ipb * W.
# ----------------------------------------------------------------------------
def _make_kernel(H, W, L):
    def kernel(xr_ref, xi_ref, p_ref, or_ref, oi_ref):
        xr = xr_ref[...]  # (H, L) f32, real-part frequency plane(s)
        xi = xi_ref[...]  # (H, L) f32, imag-part frequency plane(s)

        # --- per-offset validity masks, hoisted and computed once -----------
        row_ids = jax.lax.broadcasted_iota(jnp.int32, (H, L), 0)
        col_ids = jax.lax.broadcasted_iota(jnp.int32, (H, L), 1) % W
        row_ok = {}
        col_ok = {}
        for d in (1, 2):  # max displacement is 2 (5x5 conv)
            row_ok[d] = row_ids < (H - d)
            row_ok[-d] = row_ids >= d
            col_ok[d] = col_ids < (W - d)
            col_ok[-d] = col_ids >= d

        def tap(x, dr, dc):
            """Return s with s(i, j) = x(i+dr, j+dc), zero outside each image's
            (H, W) window ('same' conv zero padding).  Rolls go to the XLU;
            lane rolls wrap across neighbouring images in the block, but those
            positions are exactly the zero-padding positions and get masked."""
            s = x
            if dr != 0:
                s = pltpu.roll(s, shift=(-dr) % H, axis=0)
            if dc != 0:
                s = pltpu.roll(s, shift=(-dc) % L, axis=1)
            rm = row_ok.get(dr)
            cm = col_ok.get(dc)
            if rm is not None and cm is not None:
                s = jnp.where(rm & cm, s, 0.0)
            elif rm is not None:
                s = jnp.where(rm, s, 0.0)
            elif cm is not None:
                s = jnp.where(cm, s, 0.0)
            return s

        def conv_same(x, w_off, k, b_off=None):
            """Single-channel k x k 'same' conv; k*k weights live row-major in
            the packed SMEM parameter array at static offset w_off."""
            pad = k // 2
            acc = jnp.zeros((H, L), jnp.float32)
            for di in range(k):          # static Python loops -> static taps
                for dj in range(k):
                    wv = p_ref[w_off + di * k + dj]
                    acc = acc + wv * tap(x, di - pad, dj - pad)
            if b_off is not None:
                acc = acc + p_ref[b_off]
            return acc

        # conv1: Conv2d(2 -> 1, k=3, pad=1)  (first 9 weights: real channel,
        # next 9: imag channel), bias added once.
        h = conv_same(xr, OFF["w1"], 3) + conv_same(xi, OFF["w1"] + 9, 3,
                                                    OFF["b1"])

        # PReLU (single shared slope)
        a = p_ref[OFF["alpha"]]
        h = jnp.maximum(h, 0.0) + a * jnp.minimum(h, 0.0)

        # conv2: Conv2d(1 -> 1, k=3, pad=1)
        h = conv_same(h, OFF["w2"], 3, OFF["b2"])

        # Curved_state_space_model:
        #   predict_a: Conv5x5 -> ReLU -> Conv3x3 -> ReLU -> Conv1x1(1->3) -> Sigmoid
        t = jnp.maximum(conv_same(h, OFF["pa1_w"], 5, OFF["pa1_b"]), 0.0)
        t = jnp.maximum(conv_same(t, OFF["pa2_w"], 3, OFF["pa2_b"]), 0.0)
        #   x = relu(x) - relu(x - 1)   (clamp to [0, 1])
        c = jnp.maximum(h, 0.0) - jnp.maximum(h - 1.0, 0.0)
        #   3 curve iterations: x = x + a_i * x * (1 - x)
        for i in range(3):
            a_i = jax.nn.sigmoid(p_ref[OFF["pa3_w"] + i] * t
                                 + p_ref[OFF["pa3_b"] + i])
            c = c + a_i * c * (1.0 - c)

        # conv3: Conv2d(1 -> 1, k=3, pad=1)
        y = conv_same(c, OFF["w3"], 3, OFF["b3"])

        # TODO(synk): VSSBlock / PatchEmbed / PatchUnEmbed class definitions
        # were not provided with the module; that segment is treated as identity.

        # x = x + x_f  (single-channel y broadcasts over both freq channels)
        or_ref[...] = (y + xr).astype(or_ref.dtype)
        oi_ref[...] = (y + xi).astype(oi_ref.dtype)

    return kernel


# ----------------------------------------------------------------------------
# Wrapper: FFT glue + lane-dense folding + pallas_call
# ----------------------------------------------------------------------------
def causal_frequency_mamba(x, packed_params):
    """x: (B, 1, H, W) float32 NCHW.  packed_params: flat (N_PARAMS,) f32."""
    B, C, H, W = x.shape
    assert C == 1, "module is instantiated with in_channels=1"

    # FFT2 over the spatial dims; keep real/imag as two SEPARATE arrays
    # (no (B, 2, H, W) concatenate -> no extra HBM round trip).
    X = jnp.fft.fft2(x[:, 0, :, :], axes=(-2, -1))
    xr = jnp.real(X).astype(jnp.float32)  # (B, H, W)
    xi = jnp.imag(X).astype(jnp.float32)

    # Lane-dense folding: group `ipb` images per block so the lane axis is a
    # multiple of 128 (or W itself if already 128-aligned).
    if W % 128 == 0:
        ipb = 1
    else:
        ipb = 128 // math.gcd(128, W)     # lcm(W, 128) / W images per block
    Bp = int(pl.cdiv(B, ipb)) * ipb       # pad batch to a whole number of blocks
    if Bp != B:
        pad = Bp - B
        xr = jnp.concatenate([xr, jnp.zeros((pad, H, W), xr.dtype)], axis=0)
        xi = jnp.concatenate([xi, jnp.zeros((pad, H, W), xi.dtype)], axis=0)
    LB = ipb * W                          # lanes per block (multiple of 128)
    Lp = Bp * W                           # total lanes
    xr_l = jnp.transpose(xr, (1, 0, 2)).reshape(H, Lp)   # (H, Bp*W)
    xi_l = jnp.transpose(xi, (1, 0, 2)).reshape(H, Lp)

    # TODO(synk): for very tall images add an H-tile grid axis with a 2-row
    # halo (5x5 conv); the full-H-per-block layout is fine at these sizes.
    n_blocks = Bp // ipb
    kernel = _make_kernel(H, W, LB)
    img_spec = pl.BlockSpec((H, LB), lambda g: (0, g))
    smem_spec = pl.BlockSpec(memory_space=pltpu.MemorySpace.SMEM)
    grid_spec = pltpu.PrefetchScalarGridSpec(
        num_scalar_prefetch=0,
        grid=(n_blocks,),
        in_specs=[img_spec, img_spec, smem_spec],
        out_specs=[pl.BlockSpec((H, LB), lambda g: (0, g)),
                   pl.BlockSpec((H, LB), lambda g: (0, g))],
    )
    out_r, out_i = pl.pallas_call(
        kernel,
        out_shape=(jax.ShapeDtypeStruct((H, Lp), jnp.float32),
                   jax.ShapeDtypeStruct((H, Lp), jnp.float32)),
        grid_spec=grid_spec,
        compiler_params=pltpu.CompilerParams(
            dimension_semantics=("parallel",),      # shard blocks across TCs
            vmem_limit_bytes=32 * 1024 * 1024),     # explicit, v7x-safe budget
    )(xr_l, xi_l, packed_params)

    # Unfold lanes back to (B, H, W), recombine complex, inverse FFT, residual.
    yr = jnp.transpose(out_r.reshape(H, Bp, W), (1, 0, 2))[:B]
    yi = jnp.transpose(out_i.reshape(H, Bp, W), (1, 0, 2))[:B]
    comp = (yr + 1j * yi)[:, None, :, :]            # (B, 1, H, W) complex
    y = jnp.real(jnp.fft.ifft2(comp, axes=(-2, -1))).astype(jnp.float32)
    return y + x


# ----------------------------------------------------------------------------
# Deterministic parameter initialization (PyTorch-style uniform fan-in bounds)
# ----------------------------------------------------------------------------
def init_params(key):
    def u(k, shape, fan_in):
        bound = 1.0 / math.sqrt(fan_in)
        return jax.random.uniform(k, shape, jnp.float32, -bound, bound)

    ks = jax.random.split(key, 12)
    w1 = u(ks[0], (1, 2, 3, 3), 2 * 9).reshape(-1)     # conv1 weight (18,)
    b1 = u(ks[1], (1,), 2 * 9)                         # conv1 bias
    alpha = jnp.array([0.25], jnp.float32)             # PReLU init
    w2 = u(ks[2], (1, 1, 3, 3), 9).reshape(-1)         # conv2 weight (9,)
    b2 = u(ks[3], (1,), 9)
    pa1_w = u(ks[4], (1, 1, 5, 5), 25).reshape(-1)     # predict_a conv 5x5 (25,)
    pa1_b = u(ks[5], (1,), 25)
    pa2_w = u(ks[6], (1, 1, 3, 3), 9).reshape(-1)      # predict_a conv 3x3 (9,)
    pa2_b = u(ks[7], (1,), 9)
    pa3_w = u(ks[8], (3, 1, 1, 1), 1).reshape(-1)      # predict_a conv 1x1 -> 3 (3,)
    pa3_b = u(ks[9], (3,), 1)
    w3 = u(ks[10], (1, 1, 3, 3), 9).reshape(-1)        # conv3 weight (9,)
    b3 = u(ks[11], (1,), 9)
    return (w1, b1, alpha, w2, b2,
            pa1_w, pa1_b, pa2_w, pa2_b, pa3_w, pa3_b,
            w3, b3)


if __name__ == "__main__":
    key = jax.random.PRNGKey(0)
    kx, kp = jax.random.split(key)

    B, C, H, W = 2, 1, 8, 8          # small shapes; (8, 8) matches VSS x_size
    x = jax.random.normal(kx, (B, C, H, W), jnp.float32)
    params = init_params(kp)
    packed = pack_params(params)

    y = causal_frequency_mamba(x, packed)
    y = jax.block_until_ready(y)

    assert y.shape == (B, C, H, W), y.shape
    assert bool(jnp.all(jnp.isfinite(y)))
    print("KERNEL_OK")
</pallas_src>

<mosaic_0001>
module attributes {stable_mosaic.version = 11 : i64} {
  func.func @kernel(%arg0: i32, %arg1: memref<8x128xf32, #tpu.memory_space<vmem>>, %arg2: memref<8x128xf32, #tpu.memory_space<vmem>>, %arg3: memref<82xf32, #tpu.memory_space<smem>>, %arg4: memref<8x128xf32, #tpu.memory_space<vmem>>, %arg5: memref<8x128xf32, #tpu.memory_space<vmem>>) attributes {dimension_semantics = [#tpu.dimension_semantics<parallel>], iteration_bounds = array<i64: 1>, scalar_prefetch = 0 : i64, scratch_operands = 0 : i64, tpu.core_type = #tpu.core_type<tc>, window_params = [{transform_indices = @transform_0, window_bounds = array<i64: 8, 128>}, {transform_indices = @transform_1, window_bounds = array<i64: 8, 128>}, {transform_indices = @transform_2, window_bounds = array<i64: 82>}, {transform_indices = @transform_3, window_bounds = array<i64: 8, 128>}, {transform_indices = @transform_4, window_bounds = array<i64: 8, 128>}]} {
    %c0 = arith.constant 0 : index
    %c0_0 = arith.constant 0 : index
    %0 = vector.load %arg1[%c0, %c0_0] : memref<8x128xf32, #tpu.memory_space<vmem>>, vector<8x128xf32>
    %c0_1 = arith.constant 0 : index
    %c0_2 = arith.constant 0 : index
    %1 = vector.load %arg2[%c0_1, %c0_2] : memref<8x128xf32, #tpu.memory_space<vmem>>, vector<8x128xf32>
    %2 = tpu.iota {dimensions = array<i32: 0>} : vector<8x128xi32>
    %3 = tpu.iota {dimensions = array<i32: 1>} : vector<8x128xi32>
    %c8_i32 = arith.constant 8 : i32
    %c0_i32 = arith.constant 0 : i32
    %4 = arith.cmpi eq, %c8_i32, %c0_i32 : i32
    %c1_i32 = arith.constant 1 : i32
    %5 = arith.select %4, %c1_i32, %c8_i32 : i32
    %6 = vector.broadcast %5 : i32 to vector<8x128xi32>
    %7 = arith.remsi %3, %6 : vector<8x128xi32>
    %c0_i32_3 = arith.constant 0 : i32
    %8 = vector.broadcast %c0_i32_3 : i32 to vector<8x128xi32>
    %9 = arith.cmpi ne, %7, %8 : vector<8x128xi32>
    %c0_i32_4 = arith.constant 0 : i32
    %10 = vector.broadcast %c0_i32_4 : i32 to vector<8x128xi32>
    %11 = arith.cmpi slt, %7, %10 : vector<8x128xi32>
    %c0_i32_5 = arith.constant 0 : i32
    %12 = arith.cmpi slt, %5, %c0_i32_5 : i32
    %13 = vector.broadcast %12 : i1 to vector<8x128xi1>
    %14 = vector.broadcast %13 : vector<8x128xi1> to vector<8x128xi1>
    %15 = arith.xori %11, %14 : vector<8x128xi1>
    %16 = arith.andi %15, %9 : vector<8x128xi1>
    %17 = vector.broadcast %5 : i32 to vector<8x128xi32>
    %18 = arith.addi %7, %17 : vector<8x128xi32>
    %19 = arith.select %16, %18, %7 : vector<8x128xi1>, vector<8x128xi32>
    %c7_i32 = arith.constant 7 : i32
    %20 = vector.broadcast %c7_i32 : i32 to vector<8x128xi32>
    %21 = arith.cmpi slt, %2, %20 : vector<8x128xi32>
    %c1_i32_6 = arith.constant 1 : i32
    %22 = vector.broadcast %c1_i32_6 : i32 to vector<8x128xi32>
    %23 = arith.cmpi sge, %2, %22 : vector<8x128xi32>
    %c7_i32_7 = arith.constant 7 : i32
    %24 = vector.broadcast %c7_i32_7 : i32 to vector<8x128xi32>
    %25 = arith.cmpi slt, %19, %24 : vector<8x128xi32>
    %c1_i32_8 = arith.constant 1 : i32
    %26 = vector.broadcast %c1_i32_8 : i32 to vector<8x128xi32>
    %27 = arith.cmpi sge, %19, %26 : vector<8x128xi32>
    %c6_i32 = arith.constant 6 : i32
    %28 = vector.broadcast %c6_i32 : i32 to vector<8x128xi32>
    %29 = arith.cmpi slt, %2, %28 : vector<8x128xi32>
    %c2_i32 = arith.constant 2 : i32
    %30 = vector.broadcast %c2_i32 : i32 to vector<8x128xi32>
    %31 = arith.cmpi sge, %2, %30 : vector<8x128xi32>
    %c6_i32_9 = arith.constant 6 : i32
    %32 = vector.broadcast %c6_i32_9 : i32 to vector<8x128xi32>
    %33 = arith.cmpi slt, %19, %32 : vector<8x128xi32>
    %c2_i32_10 = arith.constant 2 : i32
    %34 = vector.broadcast %c2_i32_10 : i32 to vector<8x128xi32>
    %35 = arith.cmpi sge, %19, %34 : vector<8x128xi32>
    %cst = arith.constant 0.000000e+00 : f32
    %36 = vector.broadcast %cst : f32 to vector<8x128xf32>
    %c0_11 = arith.constant 0 : index
    %37 = memref.load %arg3[%c0_11] : memref<82xf32, #tpu.memory_space<smem>>
    %c1_i32_12 = arith.constant 1 : i32
    %38 = tpu.dynamic_rotate %0 by %c1_i32_12 dim 0 : vector<8x128xf32>, i32 -> vector<8x128xf32>
    %c1_i32_13 = arith.constant 1 : i32
    %39 = tpu.dynamic_rotate %38 by %c1_i32_13 dim 1 : vector<8x128xf32>, i32 -> vector<8x128xf32>
    %40 = arith.andi %23, %27 : vector<8x128xi1>
    %cst_14 = arith.constant 0.000000e+00 : f32
    %41 = vector.broadcast %cst_14 : f32 to vector<8x128xf32>
    %42 = arith.select %40, %39, %41 : vector<8x128xi1>, vector<8x128xf32>
    %43 = vector.broadcast %37 : f32 to vector<8x128xf32>
    %44 = arith.mulf %43, %42 : vector<8x128xf32>
    %45 = arith.addf %36, %44 : vector<8x128xf32>
    %c1 = arith.constant 1 : index
    %46 = memref.load %arg3[%c1] : memref<82xf32, #tpu.memory_space<smem>>
    %c1_i32_15 = arith.constant 1 : i32
    %47 = tpu.dynamic_rotate %0 by %c1_i32_15 dim 0 : vector<8x128xf32>, i32 -> vector<8x128xf32>
    %cst_16 = arith.constant 0.000000e+00 : f32
    %48 = vector.broadcast %cst_16 : f32 to vector<8x128xf32>
    %49 = arith.select %23, %47, %48 : vector<8x128xi1>, vector<8x128xf32>
    %50 = vector.broadcast %46 : f32 to vector<8x128xf32>
    %51 = arith.mulf %50, %49 : vector<8x128xf32>
    %52 = arith.addf %45, %51 : vector<8x128xf32>
    %c2 = arith.constant 2 : index
    %53 = memref.load %arg3[%c2] : memref<82xf32, #tpu.memory_space<smem>>
    %c1_i32_17 = arith.constant 1 : i32
    %54 = tpu.dynamic_rotate %0 by %c1_i32_17 dim 0 : vector<8x128xf32>, i32 -> vector<8x128xf32>
    %c127_i32 = arith.constant 127 : i32
    %55 = tpu.dynamic_rotate %54 by %c127_i32 dim 1 : vector<8x128xf32>, i32 -> vector<8x128xf32>
    %56 = arith.andi %23, %25 : vector<8x128xi1>
    %cst_18 = arith.constant 0.000000e+00 : f32
    %57 = vector.broadcast %cst_18 : f32 to vector<8x128xf32>
    %58 = arith.select %56, %55, %57 : vector<8x128xi1>, vector<8x128xf32>
    %59 = vector.broadcast %53 : f32 to vector<8x128xf32>
    %60 = arith.mulf %59, %58 : vector<8x128xf32>
    %61 = arith.addf %52, %60 : vector<8x128xf32>
    %c3 = arith.constant 3 : index
    %62 = memref.load %arg3[%c3] : memref<82xf32, #tpu.memory_space<smem>>
    %c1_i32_19 = arith.constant 1 : i32
    %63 = tpu.dynamic_rotate %0 by %c1_i32_19 dim 1 : vector<8x128xf32>, i32 -> vector<8x128xf32>
    %cst_20 = arith.constant 0.000000e+00 : f32
    %64 = vector.broadcast %cst_20 : f32 to vector<8x128xf32>
    %65 = arith.select %27, %63, %64 : vector<8x128xi1>, vector<8x128xf32>
    %66 = vector.broadcast %62 : f32 to vector<8x128xf32>
    %67 = arith.mulf %66, %65 : vector<8x128xf32>
    %68 = arith.addf %61, %67 : vector<8x128xf32>
    %c4 = arith.constant 4 : index
    %69 = memref.load %arg3[%c4] : memref<82xf32, #tpu.memory_space<smem>>
    %70 = vector.broadcast %69 : f32 to vector<8x128xf32>
    %71 = arith.mulf %70, %0 : vector<8x128xf32>
    %72 = arith.addf %68, %71 : vector<8x128xf32>
    %c5 = arith.constant 5 : index
    %73 = memref.load %arg3[%c5] : memref<82xf32, #tpu.memory_space<smem>>
    %c127_i32_21 = arith.constant 127 : i32
    %74 = tpu.dynamic_rotate %0 by %c127_i32_21 dim 1 : vector<8x128xf32>, i32 -> vector<8x128xf32>
    %cst_22 = arith.constant 0.000000e+00 : f32
    %75 = vector.broadcast %cst_22 : f32 to vector<8x128xf32>
    %76 = arith.select %25, %74, %75 : vector<8x128xi1>, vector<8x128xf32>
    %77 = vector.broadcast %73 : f32 to vector<8x128xf32>
    %78 = arith.mulf %77, %76 : vector<8x128xf32>
    %79 = arith.addf %72, %78 : vector<8x128xf32>
    %c6 = arith.constant 6 : index
    %80 = memref.load %arg3[%c6] : memref<82xf32, #tpu.memory_space<smem>>
    %c7_i32_23 = arith.constant 7 : i32
    %81 = tpu.dynamic_rotate %0 by %c7_i32_23 dim 0 : vector<8x128xf32>, i32 -> vector<8x128xf32>
    %c1_i32_24 = arith.constant 1 : i32
    %82 = tpu.dynamic_rotate %81 by %c1_i32_24 dim 1 : vector<8x128xf32>, i32 -> vector<8x128xf32>
    %83 = arith.andi %21, %27 : vector<8x128xi1>
    %cst_25 = arith.constant 0.000000e+00 : f32
    %84 = vector.broadcast %cst_25 : f32 to vector<8x128xf32>
    %85 = arith.select %83, %82, %84 : vector<8x128xi1>, vector<8x128xf32>
    %86 = vector.broadcast %80 : f32 to vector<8x128xf32>
    %87 = arith.mulf %86, %85 : vector<8x128xf32>
    %88 = arith.addf %79, %87 : vector<8x128xf32>
    %c7 = arith.constant 7 : index
    %89 = memref.load %arg3[%c7] : memref<82xf32, #tpu.memory_space<smem>>
    %c7_i32_26 = arith.constant 7 : i32
    %90 = tpu.dynamic_rotate %0 by %c7_i32_26 dim 0 : vector<8x128xf32>, i32 -> vector<8x128xf32>
    %cst_27 = arith.constant 0.000000e+00 : f32
    %91 = vector.broadcast %cst_27 : f32 to vector<8x128xf32>
    %92 = arith.select %21, %90, %91 : vector<8x128xi1>, vector<8x128xf32>
    %93 = vector.broadcast %89 : f32 to vector<8x128xf32>
    %94 = arith.mulf %93, %92 : vector<8x128xf32>
    %95 = arith.addf %88, %94 : vector<8x128xf32>
    %c8 = arith.constant 8 : index
    %96 = memref.load %arg3[%c8] : memref<82xf32, #tpu.memory_space<smem>>
    %c7_i32_28 = arith.constant 7 : i32
    %97 = tpu.dynamic_rotate %0 by %c7_i32_28 dim 0 : vector<8x128xf32>, i32 -> vector<8x128xf32>
    %c127_i32_29 = arith.constant 127 : i32
    %98 = tpu.dynamic_rotate %97 by %c127_i32_29 dim 1 : vector<8x128xf32>, i32 -> vector<8x128xf32>
    %99 = arith.andi %21, %25 : vector<8x128xi1>
    %cst_30 = arith.constant 0.000000e+00 : f32
    %100 = vector.broadcast %cst_30 : f32 to vector<8x128xf32>
    %101 = arith.select %99, %98, %100 : vector<8x128xi1>, vector<8x128xf32>
    %102 = vector.broadcast %96 : f32 to vector<8x128xf32>
    %103 = arith.mulf %102, %101 : vector<8x128xf32>
    %104 = arith.addf %95, %103 : vector<8x128xf32>
    %cst_31 = arith.constant 0.000000e+00 : f32
    %105 = vector.broadcast %cst_31 : f32 to vector<8x128xf32>
    %c9 = arith.constant 9 : index
    %106 = memref.load %arg3[%c9] : memref<82xf32, #tpu.memory_space<smem>>
    %c1_i32_32 = arith.constant 1 : i32
    %107 = tpu.dynamic_rotate %1 by %c1_i32_32 dim 0 : vector<8x128xf32>, i32 -> vector<8x128xf32>
    %c1_i32_33 = arith.constant 1 : i32
    %108 = tpu.dynamic_rotate %107 by %c1_i32_33 dim 1 : vector<8x128xf32>, i32 -> vector<8x128xf32>
    %109 = arith.andi %23, %27 : vector<8x128xi1>
    %cst_34 = arith.constant 0.000000e+00 : f32
    %110 = vector.broadcast %cst_34 : f32 to vector<8x128xf32>
    %111 = arith.select %109, %108, %110 : vector<8x128xi1>, vector<8x128xf32>
    %112 = vector.broadcast %106 : f32 to vector<8x128xf32>
    %113 = arith.mulf %112, %111 : vector<8x128xf32>
    %114 = arith.addf %105, %113 : vector<8x128xf32>
    %c10 = arith.constant 10 : index
    %115 = memref.load %arg3[%c10] : memref<82xf32, #tpu.memory_space<smem>>
    %c1_i32_35 = arith.constant 1 : i32
    %116 = tpu.dynamic_rotate %1 by %c1_i32_35 dim 0 : vector<8x128xf32>, i32 -> vector<8x128xf32>
    %cst_36 = arith.constant 0.000000e+00 : f32
    %117 = vector.broadcast %cst_36 : f32 to vector<8x128xf32>
    %118 = arith.select %23, %116, %117 : vector<8x128xi1>, vector<8x128xf32>
    %119 = vector.broadcast %115 : f32 to vector<8x128xf32>
    %120 = arith.mulf %119, %118 : vector<8x128xf32>
    %121 = arith.addf %114, %120 : vector<8x128xf32>
    %c11 = arith.constant 11 : index
    %122 = memref.load %arg3[%c11] : memref<82xf32, #tpu.memory_space<smem>>
    %c1_i32_37 = arith.constant 1 : i32
    %123 = tpu.dynamic_rotate %1 by %c1_i32_37 dim 0 : vector<8x128xf32>, i32 -> vector<8x128xf32>
    %c127_i32_38 = arith.constant 127 : i32
    %124 = tpu.dynamic_rotate %123 by %c127_i32_38 dim 1 : vector<8x128xf32>, i32 -> vector<8x128xf32>
    %125 = arith.andi %23, %25 : vector<8x128xi1>
    %cst_39 = arith.constant 0.000000e+00 : f32
    %126 = vector.broadcast %cst_39 : f32 to vector<8x128xf32>
    %127 = arith.select %125, %124, %126 : vector<8x128xi1>, vector<8x128xf32>
    %128 = vector.broadcast %122 : f32 to vector<8x128xf32>
    %129 = arith.mulf %128, %127 : vector<8x128xf32>
    %130 = arith.addf %121, %129 : vector<8x128xf32>
    %c12 = arith.constant 12 : index
    %131 = memref.load %arg3[%c12] : memref<82xf32, #tpu.memory_space<smem>>
    %c1_i32_40 = arith.constant 1 : i32
    %132 = tpu.dynamic_rotate %1 by %c1_i32_40 dim 1 : vector<8x128xf32>, i32 -> vector<8x128xf32>
    %cst_41 = arith.constant 0.000000e+00 : f32
    %133 = vector.broadcast %cst_41 : f32 to vector<8x128xf32>
    %134 = arith.select %27, %132, %133 : vector<8x128xi1>, vector<8x128xf32>
    %135 = vector.broadcast %131 : f32 to vector<8x128xf32>
    %136 = arith.mulf %135, %134 : vector<8x128xf32>
    %137 = arith.addf %130, %136 : vector<8x128xf32>
    %c13 = arith.constant 13 : index
    %138 = memref.load %arg3[%c13] : memref<82xf32, #tpu.memory_space<smem>>
    %139 = vector.broadcast %138 : f32 to vector<8x128xf32>
    %140 = arith.mulf %139, %1 : vector<8x128xf32>
    %141 = arith.addf %137, %140 : vector<8x128xf32>
    %c14 = arith.constant 14 : index
    %142 = memref.load %arg3[%c14] : memref<82xf32, #tpu.memory_space<smem>>
    %c127_i32_42 = arith.constant 127 : i32
    %143 = tpu.dynamic_rotate %1 by %c127_i32_42 dim 1 : vector<8x128xf32>, i32 -> vector<8x128xf32>
    %cst_43 = arith.constant 0.000000e+00 : f32
    %144 = vector.broadcast %cst_43 : f32 to vector<8x128xf32>
    %145 = arith.select %25, %143, %144 : vector<8x128xi1>, vector<8x128xf32>
    %146 = vector.broadcast %142 : f32 to vector<8x128xf32>
    %147 = arith.mulf %146, %145 : vector<8x128xf32>
    %148 = arith.addf %141, %147 : vector<8x128xf32>
    %c15 = arith.constant 15 : index
    %149 = memref.load %arg3[%c15] : memref<82xf32, #tpu.memory_space<smem>>
    %c7_i32_44 = arith.constant 7 : i32
    %150 = tpu.dynamic_rotate %1 by %c7_i32_44 dim 0 : vector<8x128xf32>, i32 -> vector<8x128xf32>
    %c1_i32_45 = arith.constant 1 : i32
    %151 = tpu.dynamic_rotate %150 by %c1_i32_45 dim 1 : vector<8x128xf32>, i32 -> vector<8x128xf32>
    %152 = arith.andi %21, %27 : vector<8x128xi1>
    %cst_46 = arith.constant 0.000000e+00 : f32
    %153 = vector.broadcast %cst_46 : f32 to vector<8x128xf32>
    %154 = arith.select %152, %151, %153 : vector<8x128xi1>, vector<8x128xf32>
    %155 = vector.broadcast %149 : f32 to vector<8x128xf32>
    %156 = arith.mulf %155, %154 : vector<8x128xf32>
    %157 = arith.addf %148, %156 : vector<8x128xf32>
    %c16 = arith.constant 16 : index
    %158 = memref.load %arg3[%c16] : memref<82xf32, #tpu.memory_space<smem>>
    %c7_i32_47 = arith.constant 7 : i32
    %159 = tpu.dynamic_rotate %1 by %c7_i32_47 dim 0 : vector<8x128xf32>, i32 -> vector<8x128xf32>
    %cst_48 = arith.constant 0.000000e+00 : f32
    %160 = vector.broadcast %cst_48 : f32 to vector<8x128xf32>
    %161 = arith.select %21, %159, %160 : vector<8x128xi1>, vector<8x128xf32>
    %162 = vector.broadcast %158 : f32 to vector<8x128xf32>
    %163 = arith.mulf %162, %161 : vector<8x128xf32>
    %164 = arith.addf %157, %163 : vector<8x128xf32>
    %c17 = arith.constant 17 : index
    %165 = memref.load %arg3[%c17] : memref<82xf32, #tpu.memory_space<smem>>
    %c7_i32_49 = arith.constant 7 : i32
    %166 = tpu.dynamic_rotate %1 by %c7_i32_49 dim 0 : vector<8x128xf32>, i32 -> vector<8x128xf32>
    %c127_i32_50 = arith.constant 127 : i32
    %167 = tpu.dynamic_rotate %166 by %c127_i32_50 dim 1 : vector<8x128xf32>, i32 -> vector<8x128xf32>
    %168 = arith.andi %21, %25 : vector<8x128xi1>
    %cst_51 = arith.constant 0.000000e+00 : f32
    %169 = vector.broadcast %cst_51 : f32 to vector<8x128xf32>
    %170 = arith.select %168, %167, %169 : vector<8x128xi1>, vector<8x128xf32>
    %171 = vector.broadcast %165 : f32 to vector<8x128xf32>
    %172 = arith.mulf %171, %170 : vector<8x128xf32>
    %173 = arith.addf %164, %172 : vector<8x128xf32>
    %c18 = arith.constant 18 : index
    %174 = memref.load %arg3[%c18] : memref<82xf32, #tpu.memory_space<smem>>
    %175 = vector.broadcast %174 : f32 to vector<8x128xf32>
    %176 = arith.addf %173, %175 : vector<8x128xf32>
    %177 = arith.addf %104, %176 : vector<8x128xf32>
    %c19 = arith.constant 19 : index
    %178 = memref.load %arg3[%c19] : memref<82xf32, #tpu.memory_space<smem>>
    %cst_52 = arith.constant 0.000000e+00 : f32
    %179 = vector.broadcast %cst_52 : f32 to vector<8x128xf32>
    %180 = arith.maximumf %177, %179 : vector<8x128xf32>
    %cst_53 = arith.constant 0.000000e+00 : f32
    %181 = vector.broadcast %cst_53 : f32 to vector<8x128xf32>
    %182 = arith.minimumf %177, %181 : vector<8x128xf32>
    %183 = vector.broadcast %178 : f32 to vector<8x128xf32>
    %184 = arith.mulf %183, %182 : vector<8x128xf32>
    %185 = arith.addf %180, %184 : vector<8x128xf32>
    %cst_54 = arith.constant 0.000000e+00 : f32
    %186 = vector.broadcast %cst_54 : f32 to vector<8x128xf32>
    %c20 = arith.constant 20 : index
    %187 = memref.load %arg3[%c20] : memref<82xf32, #tpu.memory_space<smem>>
    %c1_i32_55 = arith.constant 1 : i32
    %188 = tpu.dynamic_rotate %185 by %c1_i32_55 dim 0 : vector<8x128xf32>, i32 -> vector<8x128xf32>
    %c1_i32_56 = arith.constant 1 : i32
    %189 = tpu.dynamic_rotate %188 by %c1_i32_56 dim 1 : vector<8x128xf32>, i32 -> vector<8x128xf32>
    %190 = arith.andi %23, %27 : vector<8x128xi1>
    %cst_57 = arith.constant 0.000000e+00 : f32
    %191 = vector.broadcast %cst_57 : f32 to vector<8x128xf32>
    %192 = arith.select %190, %189, %191 : vector<8x128xi1>, vector<8x128xf32>
    %193 = vector.broadcast %187 : f32 to vector<8x128xf32>
    %194 = arith.mulf %193, %192 : vector<8x128xf32>
    %195 = arith.addf %186, %194 : vector<8x128xf32>
    %c21 = arith.constant 21 : index
    %196 = memref.load %arg3[%c21] : memref<82xf32, #tpu.memory_space<smem>>
    %c1_i32_58 = arith.constant 1 : i32
    %197 = tpu.dynamic_rotate %185 by %c1_i32_58 dim 0 : vector<8x128xf32>, i32 -> vector<8x128xf32>
    %cst_59 = arith.constant 0.000000e+00 : f32
    %198 = vector.broadcast %cst_59 : f32 to vector<8x128xf32>
    %199 = arith.select %23, %197, %198 : vector<8x128xi1>, vector<8x128xf32>
    %200 = vector.broadcast %196 : f32 to vector<8x128xf32>
    %201 = arith.mulf %200, %199 : vector<8x128xf32>
    %202 = arith.addf %195, %201 : vector<8x128xf32>
    %c22 = arith.constant 22 : index
    %203 = memref.load %arg3[%c22] : memref<82xf32, #tpu.memory_space<smem>>
    %c1_i32_60 = arith.constant 1 : i32
    %204 = tpu.dynamic_rotate %185 by %c1_i32_60 dim 0 : vector<8x128xf32>, i32 -> vector<8x128xf32>
    %c127_i32_61 = arith.constant 127 : i32
    %205 = tpu.dynamic_rotate %204 by %c127_i32_61 dim 1 : vector<8x128xf32>, i32 -> vector<8x128xf32>
    %206 = arith.andi %23, %25 : vector<8x128xi1>
    %cst_62 = arith.constant 0.000000e+00 : f32
    %207 = vector.broadcast %cst_62 : f32 to vector<8x128xf32>
    %208 = arith.select %206, %205, %207 : vector<8x128xi1>, vector<8x128xf32>
    %209 = vector.broadcast %203 : f32 to vector<8x128xf32>
    %210 = arith.mulf %209, %208 : vector<8x128xf32>
    %211 = arith.addf %202, %210 : vector<8x128xf32>
    %c23 = arith.constant 23 : index
    %212 = memref.load %arg3[%c23] : memref<82xf32, #tpu.memory_space<smem>>
    %c1_i32_63 = arith.constant 1 : i32
    %213 = tpu.dynamic_rotate %185 by %c1_i32_63 dim 1 : vector<8x128xf32>, i32 -> vector<8x128xf32>
    %cst_64 = arith.constant 0.000000e+00 : f32
    %214 = vector.broadcast %cst_64 : f32 to vector<8x128xf32>
    %215 = arith.select %27, %213, %214 : vector<8x128xi1>, vector<8x128xf32>
    %216 = vector.broadcast %212 : f32 to vector<8x128xf32>
    %217 = arith.mulf %216, %215 : vector<8x128xf32>
    %218 = arith.addf %211, %217 : vector<8x128xf32>
    %c24 = arith.constant 24 : index
    %219 = memref.load %arg3[%c24] : memref<82xf32, #tpu.memory_space<smem>>
    %220 = vector.broadcast %219 : f32 to vector<8x128xf32>
    %221 = arith.mulf %220, %185 : vector<8x128xf32>
    %222 = arith.addf %218, %221 : vector<8x128xf32>
    %c25 = arith.constant 25 : index
    %223 = memref.load %arg3[%c25] : memref<82xf32, #tpu.memory_space<smem>>
    %c127_i32_65 = arith.constant 127 : i32
    %224 = tpu.dynamic_rotate %185 by %c127_i32_65 dim 1 : vector<8x128xf32>, i32 -> vector<8x128xf32>
    %cst_66 = arith.constant 0.000000e+00 : f32
    %225 = vector.broadcast %cst_66 : f32 to vector<8x128xf32>
    %226 = arith.select %25, %224, %225 : vector<8x128xi1>, vector<8x128xf32>
    %227 = vector.broadcast %223 : f32 to vector<8x128xf32>
    %228 = arith.mulf %227, %226 : vector<8x128xf32>
    %229 = arith.addf %222, %228 : vector<8x128xf32>
    %c26 = arith.constant 26 : index
    %230 = memref.load %arg3[%c26] : memref<82xf32, #tpu.memory_space<smem>>
    %c7_i32_67 = arith.constant 7 : i32
    %231 = tpu.dynamic_rotate %185 by %c7_i32_67 dim 0 : vector<8x128xf32>, i32 -> vector<8x128xf32>
    %c1_i32_68 = arith.constant 1 : i32
    %232 = tpu.dynamic_rotate %231 by %c1_i32_68 dim 1 : vector<8x128xf32>, i32 -> vector<8x128xf32>
    %233 = arith.andi %21, %27 : vector<8x128xi1>
    %cst_69 = arith.constant 0.000000e+00 : f32
    %234 = vector.broadcast %cst_69 : f32 to vector<8x128xf32>
    %235 = arith.select %233, %232, %234 : vector<8x128xi1>, vector<8x128xf32>
    %236 = vector.broadcast %230 : f32 to vector<8x128xf32>
    %237 = arith.mulf %236, %235 : vector<8x128xf32>
    %238 = arith.addf %229, %237 : vector<8x128xf32>
    %c27 = arith.constant 27 : index
    %239 = memref.load %arg3[%c27] : memref<82xf32, #tpu.memory_space<smem>>
    %c7_i32_70 = arith.constant 7 : i32
    %240 = tpu.dynamic_rotate %185 by %c7_i32_70 dim 0 : vector<8x128xf32>, i32 -> vector<8x128xf32>
    %cst_71 = arith.constant 0.000000e+00 : f32
    %241 = vector.broadcast %cst_71 : f32 to vector<8x128xf32>
    %242 = arith.select %21, %240, %241 : vector<8x128xi1>, vector<8x128xf32>
    %243 = vector.broadcast %239 : f32 to vector<8x128xf32>
    %244 = arith.mulf %243, %242 : vector<8x128xf32>
    %245 = arith.addf %238, %244 : vector<8x128xf32>
    %c28 = arith.constant 28 : index
    %246 = memref.load %arg3[%c28] : memref<82xf32, #tpu.memory_space<smem>>
    %c7_i32_72 = arith.constant 7 : i32
    %247 = tpu.dynamic_rotate %185 by %c7_i32_72 dim 0 : vector<8x128xf32>, i32 -> vector<8x128xf32>
    %c127_i32_73 = arith.constant 127 : i32
    %248 = tpu.dynamic_rotate %247 by %c127_i32_73 dim 1 : vector<8x128xf32>, i32 -> vector<8x128xf32>
    %249 = arith.andi %21, %25 : vector<8x128xi1>
    %cst_74 = arith.constant 0.000000e+00 : f32
    %250 = vector.broadcast %cst_74 : f32 to vector<8x128xf32>
    %251 = arith.select %249, %248, %250 : vector<8x128xi1>, vector<8x128xf32>
    %252 = vector.broadcast %246 : f32 to vector<8x128xf32>
    %253 = arith.mulf %252, %251 : vector<8x128xf32>
    %254 = arith.addf %245, %253 : vector<8x128xf32>
    %c29 = arith.constant 29 : index
    %255 = memref.load %arg3[%c29] : memref<82xf32, #tpu.memory_space<smem>>
    %256 = vector.broadcast %255 : f32 to vector<8x128xf32>
    %257 = arith.addf %254, %256 : vector<8x128xf32>
    %cst_75 = arith.constant 0.000000e+00 : f32
    %258 = vector.broadcast %cst_75 : f32 to vector<8x128xf32>
    %c30 = arith.constant 30 : index
    %259 = memref.load %arg3[%c30] : memref<82xf32, #tpu.memory_space<smem>>
    %c2_i32_76 = arith.constant 2 : i32
    %260 = tpu.dynamic_rotate %257 by %c2_i32_76 dim 0 : vector<8x128xf32>, i32 -> vector<8x128xf32>
    %c2_i32_77 = arith.constant 2 : i32
    %261 = tpu.dynamic_rotate %260 by %c2_i32_77 dim 1 : vector<8x128xf32>, i32 -> vector<8x128xf32>
    %262 = arith.andi %31, %35 : vector<8x128xi1>
    %cst_78 = arith.constant 0.000000e+00 : f32
    %263 = vector.broadcast %cst_78 : f32 to vector<8x128xf32>
    %264 = arith.select %262, %261, %263 : vector<8x128xi1>, vector<8x128xf32>
    %265 = vector.broadcast %259 : f32 to vector<8x128xf32>
    %266 = arith.mulf %265, %264 : vector<8x128xf32>
    %267 = arith.addf %258, %266 : vector<8x128xf32>
    %c31 = arith.constant 31 : index
    %268 = memref.load %arg3[%c31] : memref<82xf32, #tpu.memory_space<smem>>
    %c2_i32_79 = arith.constant 2 : i32
    %269 = tpu.dynamic_rotate %257 by %c2_i32_79 dim 0 : vector<8x128xf32>, i32 -> vector<8x128xf32>
    %c1_i32_80 = arith.constant 1 : i32
    %270 = tpu.dynamic_rotate %269 by %c1_i32_80 dim 1 : vector<8x128xf32>, i32 -> vector<8x128xf32>
    %271 = arith.andi %31, %27 : vector<8x128xi1>
    %cst_81 = arith.constant 0.000000e+00 : f32
    %272 = vector.broadcast %cst_81 : f32 to vector<8x128xf32>
    %273 = arith.select %271, %270, %272 : vector<8x128xi1>, vector<8x128xf32>
    %274 = vector.broadcast %268 : f32 to vector<8x128xf32>
    %275 = arith.mulf %274, %273 : vector<8x128xf32>
    %276 = arith.addf %267, %275 : vector<8x128xf32>
    %c32 = arith.constant 32 : index
    %277 = memref.load %arg3[%c32] : memref<82xf32, #tpu.memory_space<smem>>
    %c2_i32_82 = arith.constant 2 : i32
    %278 = tpu.dynamic_rotate %257 by %c2_i32_82 dim 0 : vector<8x128xf32>, i32 -> vector<8x128xf32>
    %cst_83 = arith.constant 0.000000e+00 : f32
    %279 = vector.broadcast %cst_83 : f32 to vector<8x128xf32>
    %280 = arith.select %31, %278, %279 : vector<8x128xi1>, vector<8x128xf32>
    %281 = vector.broadcast %277 : f32 to vector<8x128xf32>
    %282 = arith.mulf %281, %280 : vector<8x128xf32>
    %283 = arith.addf %276, %282 : vector<8x128xf32>
    %c33 = arith.constant 33 : index
    %284 = memref.load %arg3[%c33] : memref<82xf32, #tpu.memory_space<smem>>
    %c2_i32_84 = arith.constant 2 : i32
    %285 = tpu.dynamic_rotate %257 by %c2_i32_84 dim 0 : vector<8x128xf32>, i32 -> vector<8x128xf32>
    %c127_i32_85 = arith.constant 127 : i32
    %286 = tpu.dynamic_rotate %285 by %c127_i32_85 dim 1 : vector<8x128xf32>, i32 -> vector<8x128xf32>
    %287 = arith.andi %31, %25 : vector<8x128xi1>
    %cst_86 = arith.constant 0.000000e+00 : f32
    %288 = vector.broadcast %cst_86 : f32 to vector<8x128xf32>
    %289 = arith.select %287, %286, %288 : vector<8x128xi1>, vector<8x128xf32>
    %290 = vector.broadcast %284 : f32 to vector<8x128xf32>
    %291 = arith.mulf %290, %289 : vector<8x128xf32>
    %292 = arith.addf %283, %291 : vector<8x128xf32>
    %c34 = arith.constant 34 : index
    %293 = memref.load %arg3[%c34] : memref<82xf32, #tpu.memory_space<smem>>
    %c2_i32_87 = arith.constant 2 : i32
    %294 = tpu.dynamic_rotate %257 by %c2_i32_87 dim 0 : vector<8x128xf32>, i32 -> vector<8x128xf32>
    %c126_i32 = arith.constant 126 : i32
    %295 = tpu.dynamic_rotate %294 by %c126_i32 dim 1 : vector<8x128xf32>, i32 -> vector<8x128xf32>
    %296 = arith.andi %31, %33 : vector<8x128xi1>
    %cst_88 = arith.constant 0.000000e+00 : f32
    %297 = vector.broadcast %cst_88 : f32 to vector<8x128xf32>
    %298 = arith.select %296, %295, %297 : vector<8x128xi1>, vector<8x128xf32>
    %299 = vector.broadcast %293 : f32 to vector<8x128xf32>
    %300 = arith.mulf %299, %298 : vector<8x128xf32>
    %301 = arith.addf %292, %300 : vector<8x128xf32>
    %c35 = arith.constant 35 : index
    %302 = memref.load %arg3[%c35] : memref<82xf32, #tpu.memory_space<smem>>
    %c1_i32_89 = arith.constant 1 : i32
    %303 = tpu.dynamic_rotate %257 by %c1_i32_89 dim 0 : vector<8x128xf32>, i32 -> vector<8x128xf32>
    %c2_i32_90 = arith.constant 2 : i32
    %304 = tpu.dynamic_rotate %303 by %c2_i32_90 dim 1 : vector<8x128xf32>, i32 -> vector<8x128xf32>
    %305 = arith.andi %23, %35 : vector<8x128xi1>
    %cst_91 = arith.constant 0.000000e+00 : f32
    %306 = vector.broadcast %cst_91 : f32 to vector<8x128xf32>
    %307 = arith.select %305, %304, %306 : vector<8x128xi1>, vector<8x128xf32>
    %308 = vector.broadcast %302 : f32 to vector<8x128xf32>
    %309 = arith.mulf %308, %307 : vector<8x128xf32>
    %310 = arith.addf %301, %309 : vector<8x128xf32>
    %c36 = arith.constant 36 : index
    %311 = memref.load %arg3[%c36] : memref<82xf32, #tpu.memory_space<smem>>
    %c1_i32_92 = arith.constant 1 : i32
    %312 = tpu.dynamic_rotate %257 by %c1_i32_92 dim 0 : vector<8x128xf32>, i32 -> vector<8x128xf32>
    %c1_i32_93 = arith.constant 1 : i32
    %313 = tpu.dynamic_rotate %312 by %c1_i32_93 dim 1 : vector<8x128xf32>, i32 -> vector<8x128xf32>
    %314 = arith.andi %23, %27 : vector<8x128xi1>
    %cst_94 = arith.constant 0.000000e+00 : f32
    %315 = vector.broadcast %cst_94 : f32 to vector<8x128xf32>
    %316 = arith.select %314, %313, %315 : vector<8x128xi1>, vector<8x128xf32>
    %317 = vector.broadcast %311 : f32 to vector<8x128xf32>
    %318 = arith.mulf %317, %316 : vector<8x128xf32>
    %319 = arith.addf %310, %318 : vector<8x128xf32>
    %c37 = arith.constant 37 : index
    %320 = memref.load %arg3[%c37] : memref<82xf32, #tpu.memory_space<smem>>
    %c1_i32_95 = arith.constant 1 : i32
    %321 = tpu.dynamic_rotate %257 by %c1_i32_95 dim 0 : vector<8x128xf32>, i32 -> vector<8x128xf32>
    %cst_96 = arith.constant 0.000000e+00 : f32
    %322 = vector.broadcast %cst_96 : f32 to vector<8x128xf32>
    %323 = arith.select %23, %321, %322 : vector<8x128xi1>, vector<8x128xf32>
    %324 = vector.broadcast %320 : f32 to vector<8x128xf32>
    %325 = arith.mulf %324, %323 : vector<8x128xf32>
    %326 = arith.addf %319, %325 : vector<8x128xf32>
    %c38 = arith.constant 38 : index
    %327 = memref.load %arg3[%c38] : memref<82xf32, #tpu.memory_space<smem>>
    %c1_i32_97 = arith.constant 1 : i32
    %328 = tpu.dynamic_rotate %257 by %c1_i32_97 dim 0 : vector<8x128xf32>, i32 -> vector<8x128xf32>
    %c127_i32_98 = arith.constant 127 : i32
    %329 = tpu.dynamic_rotate %328 by %c127_i32_98 dim 1 : vector<8x128xf32>, i32 -> vector<8x128xf32>
    %330 = arith.andi %23, %25 : vector<8x128xi1>
    %cst_99 = arith.constant 0.000000e+00 : f32
    %331 = vector.broadcast %cst_99 : f32 to vector<8x128xf32>
    %332 = arith.select %330, %329, %331 : vector<8x128xi1>, vector<8x128xf32>
    %333 = vector.broadcast %327 : f32 to vector<8x128xf32>
    %334 = arith.mulf %333, %332 : vector<8x128xf32>
    %335 = arith.addf %326, %334 : vector<8x128xf32>
    %c39 = arith.constant 39 : index
    %336 = memref.load %arg3[%c39] : memref<82xf32, #tpu.memory_space<smem>>
    %c1_i32_100 = arith.constant 1 : i32
    %337 = tpu.dynamic_rotate %257 by %c1_i32_100 dim 0 : vector<8x128xf32>, i32 -> vector<8x128xf32>
    %c126_i32_101 = arith.constant 126 : i32
    %338 = tpu.dynamic_rotate %337 by %c126_i32_101 dim 1 : vector<8x128xf32>, i32 -> vector<8x128xf32>
    %339 = arith.andi %23, %33 : vector<8x128xi1>
    %cst_102 = arith.constant 0.000000e+00 : f32
    %340 = vector.broadcast %cst_102 : f32 to vector<8x128xf32>
    %341 = arith.select %339, %338, %340 : vector<8x128xi1>, vector<8x128xf32>
    %342 = vector.broadcast %336 : f32 to vector<8x128xf32>
    %343 = arith.mulf %342, %341 : vector<8x128xf32>
    %344 = arith.addf %335, %343 : vector<8x128xf32>
    %c40 = arith.constant 40 : index
    %345 = memref.load %arg3[%c40] : memref<82xf32, #tpu.memory_space<smem>>
    %c2_i32_103 = arith.constant 2 : i32
    %346 = tpu.dynamic_rotate %257 by %c2_i32_103 dim 1 : vector<8x128xf32>, i32 -> vector<8x128xf32>
    %cst_104 = arith.constant 0.000000e+00 : f32
    %347 = vector.broadcast %cst_104 : f32 to vector<8x128xf32>
    %348 = arith.select %35, %346, %347 : vector<8x128xi1>, vector<8x128xf32>
    %349 = vector.broadcast %345 : f32 to vector<8x128xf32>
    %350 = arith.mulf %349, %348 : vector<8x128xf32>
    %351 = arith.addf %344, %350 : vector<8x128xf32>
    %c41 = arith.constant 41 : index
    %352 = memref.load %arg3[%c41] : memref<82xf32, #tpu.memory_space<smem>>
    %c1_i32_105 = arith.constant 1 : i32
    %353 = tpu.dynamic_rotate %257 by %c1_i32_105 dim 1 : vector<8x128xf32>, i32 -> vector<8x128xf32>
    %cst_106 = arith.constant 0.000000e+00 : f32
    %354 = vector.broadcast %cst_106 : f32 to vector<8x128xf32>
    %355 = arith.select %27, %353, %354 : vector<8x128xi1>, vector<8x128xf32>
    %356 = vector.broadcast %352 : f32 to vector<8x128xf32>
    %357 = arith.mulf %356, %355 : vector<8x128xf32>
    %358 = arith.addf %351, %357 : vector<8x128xf32>
    %c42 = arith.constant 42 : index
    %359 = memref.load %arg3[%c42] : memref<82xf32, #tpu.memory_space<smem>>
    %360 = vector.broadcast %359 : f32 to vector<8x128xf32>
    %361 = arith.mulf %360, %257 : vector<8x128xf32>
    %362 = arith.addf %358, %361 : vector<8x128xf32>
    %c43 = arith.constant 43 : index
    %363 = memref.load %arg3[%c43] : memref<82xf32, #tpu.memory_space<smem>>
    %c127_i32_107 = arith.constant 127 : i32
    %364 = tpu.dynamic_rotate %257 by %c127_i32_107 dim 1 : vector<8x128xf32>, i32 -> vector<8x128xf32>
    %cst_108 = arith.constant 0.000000e+00 : f32
    %365 = vector.broadcast %cst_108 : f32 to vector<8x128xf32>
    %366 = arith.select %25, %364, %365 : vector<8x128xi1>, vector<8x128xf32>
    %367 = vector.broadcast %363 : f32 to vector<8x128xf32>
    %368 = arith.mulf %367, %366 : vector<8x128xf32>
    %369 = arith.addf %362, %368 : vector<8x128xf32>
    %c44 = arith.constant 44 : index
    %370 = memref.load %arg3[%c44] : memref<82xf32, #tpu.memory_space<smem>>
    %c126_i32_109 = arith.constant 126 : i32
    %371 = tpu.dynamic_rotate %257 by %c126_i32_109 dim 1 : vector<8x128xf32>, i32 -> vector<8x128xf32>
    %cst_110 = arith.constant 0.000000e+00 : f32
    %372 = vector.broadcast %cst_110 : f32 to vector<8x128xf32>
    %373 = arith.select %33, %371, %372 : vector<8x128xi1>, vector<8x128xf32>
    %374 = vector.broadcast %370 : f32 to vector<8x128xf32>
    %375 = arith.mulf %374, %373 : vector<8x128xf32>
    %376 = arith.addf %369, %375 : vector<8x128xf32>
    %c45 = arith.constant 45 : index
    %377 = memref.load %arg3[%c45] : memref<82xf32, #tpu.memory_space<smem>>
    %c7_i32_111 = arith.constant 7 : i32
    %378 = tpu.dynamic_rotate %257 by %c7_i32_111 dim 0 : vector<8x128xf32>, i32 -> vector<8x128xf32>
    %c2_i32_112 = arith.constant 2 : i32
    %379 = tpu.dynamic_rotate %378 by %c2_i32_112 dim 1 : vector<8x128xf32>, i32 -> vector<8x128xf32>
    %380 = arith.andi %21, %35 : vector<8x128xi1>
    %cst_113 = arith.constant 0.000000e+00 : f32
    %381 = vector.broadcast %cst_113 : f32 to vector<8x128xf32>
    %382 = arith.select %380, %379, %381 : vector<8x128xi1>, vector<8x128xf32>
    %383 = vector.broadcast %377 : f32 to vector<8x128xf32>
    %384 = arith.mulf %383, %382 : vector<8x128xf32>
    %385 = arith.addf %376, %384 : vector<8x128xf32>
    %c46 = arith.constant 46 : index
    %386 = memref.load %arg3[%c46] : memref<82xf32, #tpu.memory_space<smem>>
    %c7_i32_114 = arith.constant 7 : i32
    %387 = tpu.dynamic_rotate %257 by %c7_i32_114 dim 0 : vector<8x128xf32>, i32 -> vector<8x128xf32>
    %c1_i32_115 = arith.constant 1 : i32
    %388 = tpu.dynamic_rotate %387 by %c1_i32_115 dim 1 : vector<8x128xf32>, i32 -> vector<8x128xf32>
    %389 = arith.andi %21, %27 : vector<8x128xi1>
    %cst_116 = arith.constant 0.000000e+00 : f32
    %390 = vector.broadcast %cst_116 : f32 to vector<8x128xf32>
    %391 = arith.select %389, %388, %390 : vector<8x128xi1>, vector<8x128xf32>
    %392 = vector.broadcast %386 : f32 to vector<8x128xf32>
    %393 = arith.mulf %392, %391 : vector<8x128xf32>
    %394 = arith.addf %385, %393 : vector<8x128xf32>
    %c47 = arith.constant 47 : index
    %395 = memref.load %arg3[%c47] : memref<82xf32, #tpu.memory_space<smem>>
    %c7_i32_117 = arith.constant 7 : i32
    %396 = tpu.dynamic_rotate %257 by %c7_i32_117 dim 0 : vector<8x128xf32>, i32 -> vector<8x128xf32>
    %cst_118 = arith.constant 0.000000e+00 : f32
    %397 = vector.broadcast %cst_118 : f32 to vector<8x128xf32>
    %398 = arith.select %21, %396, %397 : vector<8x128xi1>, vector<8x128xf32>
    %399 = vector.broadcast %395 : f32 to vector<8x128xf32>
    %400 = arith.mulf %399, %398 : vector<8x128xf32>
    %401 = arith.addf %394, %400 : vector<8x128xf32>
    %c48 = arith.constant 48 : index
    %402 = memref.load %arg3[%c48] : memref<82xf32, #tpu.memory_space<smem>>
    %c7_i32_119 = arith.constant 7 : i32
    %403 = tpu.dynamic_rotate %257 by %c7_i32_119 dim 0 : vector<8x128xf32>, i32 -> vector<8x128xf32>
    %c127_i32_120 = arith.constant 127 : i32
    %404 = tpu.dynamic_rotate %403 by %c127_i32_120 dim 1 : vector<8x128xf32>, i32 -> vector<8x128xf32>
    %405 = arith.andi %21, %25 : vector<8x128xi1>
    %cst_121 = arith.constant 0.000000e+00 : f32
    %406 = vector.broadcast %cst_121 : f32 to vector<8x128xf32>
    %407 = arith.select %405, %404, %406 : vector<8x128xi1>, vector<8x128xf32>
    %408 = vector.broadcast %402 : f32 to vector<8x128xf32>
    %409 = arith.mulf %408, %407 : vector<8x128xf32>
    %410 = arith.addf %401, %409 : vector<8x128xf32>
    %c49 = arith.constant 49 : index
    %411 = memref.load %arg3[%c49] : memref<82xf32, #tpu.memory_space<smem>>
    %c7_i32_122 = arith.constant 7 : i32
    %412 = tpu.dynamic_rotate %257 by %c7_i32_122 dim 0 : vector<8x128xf32>, i32 -> vector<8x128xf32>
    %c126_i32_123 = arith.constant 126 : i32
    %413 = tpu.dynamic_rotate %412 by %c126_i32_123 dim 1 : vector<8x128xf32>, i32 -> vector<8x128xf32>
    %414 = arith.andi %21, %33 : vector<8x128xi1>
    %cst_124 = arith.constant 0.000000e+00 : f32
    %415 = vector.broadcast %cst_124 : f32 to vector<8x128xf32>
    %416 = arith.select %414, %413, %415 : vector<8x128xi1>, vector<8x128xf32>
    %417 = vector.broadcast %411 : f32 to vector<8x128xf32>
    %418 = arith.mulf %417, %416 : vector<8x128xf32>
    %419 = arith.addf %410, %418 : vector<8x128xf32>
    %c50 = arith.constant 50 : index
    %420 = memref.load %arg3[%c50] : memref<82xf32, #tpu.memory_space<smem>>
    %c6_i32_125 = arith.constant 6 : i32
    %421 = tpu.dynamic_rotate %257 by %c6_i32_125 dim 0 : vector<8x128xf32>, i32 -> vector<8x128xf32>
    %c2_i32_126 = arith.constant 2 : i32
    %422 = tpu.dynamic_rotate %421 by %c2_i32_126 dim 1 : vector<8x128xf32>, i32 -> vector<8x128xf32>
    %423 = arith.andi %29, %35 : vector<8x128xi1>
    %cst_127 = arith.constant 0.000000e+00 : f32
    %424 = vector.broadcast %cst_127 : f32 to vector<8x128xf32>
    %425 = arith.select %423, %422, %424 : vector<8x128xi1>, vector<8x128xf32>
    %426 = vector.broadcast %420 : f32 to vector<8x128xf32>
    %427 = arith.mulf %426, %425 : vector<8x128xf32>
    %428 = arith.addf %419, %427 : vector<8x128xf32>
    %c51 = arith.constant 51 : index
    %429 = memref.load %arg3[%c51] : memref<82xf32, #tpu.memory_space<smem>>
    %c6_i32_128 = arith.constant 6 : i32
    %430 = tpu.dynamic_rotate %257 by %c6_i32_128 dim 0 : vector<8x128xf32>, i32 -> vector<8x128xf32>
    %c1_i32_129 = arith.constant 1 : i32
    %431 = tpu.dynamic_rotate %430 by %c1_i32_129 dim 1 : vector<8x128xf32>, i32 -> vector<8x128xf32>
    %432 = arith.andi %29, %27 : vector<8x128xi1>
    %cst_130 = arith.constant 0.000000e+00 : f32
    %433 = vector.broadcast %cst_130 : f32 to vector<8x128xf32>
    %434 = arith.select %432, %431, %433 : vector<8x128xi1>, vector<8x128xf32>
    %435 = vector.broadcast %429 : f32 to vector<8x128xf32>
    %436 = arith.mulf %435, %434 : vector<8x128xf32>
    %437 = arith.addf %428, %436 : vector<8x128xf32>
    %c52 = arith.constant 52 : index
    %438 = memref.load %arg3[%c52] : memref<82xf32, #tpu.memory_space<smem>>
    %c6_i32_131 = arith.constant 6 : i32
    %439 = tpu.dynamic_rotate %257 by %c6_i32_131 dim 0 : vector<8x128xf32>, i32 -> vector<8x128xf32>
    %cst_132 = arith.constant 0.000000e+00 : f32
    %440 = vector.broadcast %cst_132 : f32 to vector<8x128xf32>
    %441 = arith.select %29, %439, %440 : vector<8x128xi1>, vector<8x128xf32>
    %442 = vector.broadcast %438 : f32 to vector<8x128xf32>
    %443 = arith.mulf %442, %441 : vector<8x128xf32>
    %444 = arith.addf %437, %443 : vector<8x128xf32>
    %c53 = arith.constant 53 : index
    %445 = memref.load %arg3[%c53] : memref<82xf32, #tpu.memory_space<smem>>
    %c6_i32_133 = arith.constant 6 : i32
    %446 = tpu.dynamic_rotate %257 by %c6_i32_133 dim 0 : vector<8x128xf32>, i32 -> vector<8x128xf32>
    %c127_i32_134 = arith.constant 127 : i32
    %447 = tpu.dynamic_rotate %446 by %c127_i32_134 dim 1 : vector<8x128xf32>, i32 -> vector<8x128xf32>
    %448 = arith.andi %29, %25 : vector<8x128xi1>
    %cst_135 = arith.constant 0.000000e+00 : f32
    %449 = vector.broadcast %cst_135 : f32 to vector<8x128xf32>
    %450 = arith.select %448, %447, %449 : vector<8x128xi1>, vector<8x128xf32>
    %451 = vector.broadcast %445 : f32 to vector<8x128xf32>
    %452 = arith.mulf %451, %450 : vector<8x128xf32>
    %453 = arith.addf %444, %452 : vector<8x128xf32>
    %c54 = arith.constant 54 : index
    %454 = memref.load %arg3[%c54] : memref<82xf32, #tpu.memory_space<smem>>
    %c6_i32_136 = arith.constant 6 : i32
    %455 = tpu.dynamic_rotate %257 by %c6_i32_136 dim 0 : vector<8x128xf32>, i32 -> vector<8x128xf32>
    %c126_i32_137 = arith.constant 126 : i32
    %456 = tpu.dynamic_rotate %455 by %c126_i32_137 dim 1 : vector<8x128xf32>, i32 -> vector<8x128xf32>
    %457 = arith.andi %29, %33 : vector<8x128xi1>
    %cst_138 = arith.constant 0.000000e+00 : f32
    %458 = vector.broadcast %cst_138 : f32 to vector<8x128xf32>
    %459 = arith.select %457, %456, %458 : vector<8x128xi1>, vector<8x128xf32>
    %460 = vector.broadcast %454 : f32 to vector<8x128xf32>
    %461 = arith.mulf %460, %459 : vector<8x128xf32>
    %462 = arith.addf %453, %461 : vector<8x128xf32>
    %c55 = arith.constant 55 : index
    %463 = memref.load %arg3[%c55] : memref<82xf32, #tpu.memory_space<smem>>
    %464 = vector.broadcast %463 : f32 to vector<8x128xf32>
    %465 = arith.addf %462, %464 : vector<8x128xf32>
    %cst_139 = arith.constant 0.000000e+00 : f32
    %466 = vector.broadcast %cst_139 : f32 to vector<8x128xf32>
    %467 = arith.maximumf %465, %466 : vector<8x128xf32>
    %cst_140 = arith.constant 0.000000e+00 : f32
    %468 = vector.broadcast %cst_140 : f32 to vector<8x128xf32>
    %c56 = arith.constant 56 : index
    %469 = memref.load %arg3[%c56] : memref<82xf32, #tpu.memory_space<smem>>
    %c1_i32_141 = arith.constant 1 : i32
    %470 = tpu.dynamic_rotate %467 by %c1_i32_141 dim 0 : vector<8x128xf32>, i32 -> vector<8x128xf32>
    %c1_i32_142 = arith.constant 1 : i32
    %471 = tpu.dynamic_rotate %470 by %c1_i32_142 dim 1 : vector<8x128xf32>, i32 -> vector<8x128xf32>
    %472 = arith.andi %23, %27 : vector<8x128xi1>
    %cst_143 = arith.constant 0.000000e+00 : f32
    %473 = vector.broadcast %cst_143 : f32 to vector<8x128xf32>
    %474 = arith.select %472, %471, %473 : vector<8x128xi1>, vector<8x128xf32>
    %475 = vector.broadcast %469 : f32 to vector<8x128xf32>
    %476 = arith.mulf %475, %474 : vector<8x128xf32>
    %477 = arith.addf %468, %476 : vector<8x128xf32>
    %c57 = arith.constant 57 : index
    %478 = memref.load %arg3[%c57] : memref<82xf32, #tpu.memory_space<smem>>
    %c1_i32_144 = arith.constant 1 : i32
    %479 = tpu.dynamic_rotate %467 by %c1_i32_144 dim 0 : vector<8x128xf32>, i32 -> vector<8x128xf32>
    %cst_145 = arith.constant 0.000000e+00 : f32
    %480 = vector.broadcast %cst_145 : f32 to vector<8x128xf32>
    %481 = arith.select %23, %479, %480 : vector<8x128xi1>, vector<8x128xf32>
    %482 = vector.broadcast %478 : f32 to vector<8x128xf32>
    %483 = arith.mulf %482, %481 : vector<8x128xf32>
    %484 = arith.addf %477, %483 : vector<8x128xf32>
    %c58 = arith.constant 58 : index
    %485 = memref.load %arg3[%c58] : memref<82xf32, #tpu.memory_space<smem>>
    %c1_i32_146 = arith.constant 1 : i32
    %486 = tpu.dynamic_rotate %467 by %c1_i32_146 dim 0 : vector<8x128xf32>, i32 -> vector<8x128xf32>
    %c127_i32_147 = arith.constant 127 : i32
    %487 = tpu.dynamic_rotate %486 by %c127_i32_147 dim 1 : vector<8x128xf32>, i32 -> vector<8x128xf32>
    %488 = arith.andi %23, %25 : vector<8x128xi1>
    %cst_148 = arith.constant 0.000000e+00 : f32
    %489 = vector.broadcast %cst_148 : f32 to vector<8x128xf32>
    %490 = arith.select %488, %487, %489 : vector<8x128xi1>, vector<8x128xf32>
    %491 = vector.broadcast %485 : f32 to vector<8x128xf32>
    %492 = arith.mulf %491, %490 : vector<8x128xf32>
    %493 = arith.addf %484, %492 : vector<8x128xf32>
    %c59 = arith.constant 59 : index
    %494 = memref.load %arg3[%c59] : memref<82xf32, #tpu.memory_space<smem>>
    %c1_i32_149 = arith.constant 1 : i32
    %495 = tpu.dynamic_rotate %467 by %c1_i32_149 dim 1 : vector<8x128xf32>, i32 -> vector<8x128xf32>
    %cst_150 = arith.constant 0.000000e+00 : f32
    %496 = vector.broadcast %cst_150 : f32 to vector<8x128xf32>
    %497 = arith.select %27, %495, %496 : vector<8x128xi1>, vector<8x128xf32>
    %498 = vector.broadcast %494 : f32 to vector<8x128xf32>
    %499 = arith.mulf %498, %497 : vector<8x128xf32>
    %500 = arith.addf %493, %499 : vector<8x128xf32>
    %c60 = arith.constant 60 : index
    %501 = memref.load %arg3[%c60] : memref<82xf32, #tpu.memory_space<smem>>
    %502 = vector.broadcast %501 : f32 to vector<8x128xf32>
    %503 = arith.mulf %502, %467 : vector<8x128xf32>
    %504 = arith.addf %500, %503 : vector<8x128xf32>
    %c61 = arith.constant 61 : index
    %505 = memref.load %arg3[%c61] : memref<82xf32, #tpu.memory_space<smem>>
    %c127_i32_151 = arith.constant 127 : i32
    %506 = tpu.dynamic_rotate %467 by %c127_i32_151 dim 1 : vector<8x128xf32>, i32 -> vector<8x128xf32>
    %cst_152 = arith.constant 0.000000e+00 : f32
    %507 = vector.broadcast %cst_152 : f32 to vector<8x128xf32>
    %508 = arith.select %25, %506, %507 : vector<8x128xi1>, vector<8x128xf32>
    %509 = vector.broadcast %505 : f32 to vector<8x128xf32>
    %510 = arith.mulf %509, %508 : vector<8x128xf32>
    %511 = arith.addf %504, %510 : vector<8x128xf32>
    %c62 = arith.constant 62 : index
    %512 = memref.load %arg3[%c62] : memref<82xf32, #tpu.memory_space<smem>>
    %c7_i32_153 = arith.constant 7 : i32
    %513 = tpu.dynamic_rotate %467 by %c7_i32_153 dim 0 : vector<8x128xf32>, i32 -> vector<8x128xf32>
    %c1_i32_154 = arith.constant 1 : i32
    %514 = tpu.dynamic_rotate %513 by %c1_i32_154 dim 1 : vector<8x128xf32>, i32 -> vector<8x128xf32>
    %515 = arith.andi %21, %27 : vector<8x128xi1>
    %cst_155 = arith.constant 0.000000e+00 : f32
    %516 = vector.broadcast %cst_155 : f32 to vector<8x128xf32>
    %517 = arith.select %515, %514, %516 : vector<8x128xi1>, vector<8x128xf32>
    %518 = vector.broadcast %512 : f32 to vector<8x128xf32>
    %519 = arith.mulf %518, %517 : vector<8x128xf32>
    %520 = arith.addf %511, %519 : vector<8x128xf32>
    %c63 = arith.constant 63 : index
    %521 = memref.load %arg3[%c63] : memref<82xf32, #tpu.memory_space<smem>>
    %c7_i32_156 = arith.constant 7 : i32
    %522 = tpu.dynamic_rotate %467 by %c7_i32_156 dim 0 : vector<8x128xf32>, i32 -> vector<8x128xf32>
    %cst_157 = arith.constant 0.000000e+00 : f32
    %523 = vector.broadcast %cst_157 : f32 to vector<8x128xf32>
    %524 = arith.select %21, %522, %523 : vector<8x128xi1>, vector<8x128xf32>
    %525 = vector.broadcast %521 : f32 to vector<8x128xf32>
    %526 = arith.mulf %525, %524 : vector<8x128xf32>
    %527 = arith.addf %520, %526 : vector<8x128xf32>
    %c64 = arith.constant 64 : index
    %528 = memref.load %arg3[%c64] : memref<82xf32, #tpu.memory_space<smem>>
    %c7_i32_158 = arith.constant 7 : i32
    %529 = tpu.dynamic_rotate %467 by %c7_i32_158 dim 0 : vector<8x128xf32>, i32 -> vector<8x128xf32>
    %c127_i32_159 = arith.constant 127 : i32
    %530 = tpu.dynamic_rotate %529 by %c127_i32_159 dim 1 : vector<8x128xf32>, i32 -> vector<8x128xf32>
    %531 = arith.andi %21, %25 : vector<8x128xi1>
    %cst_160 = arith.constant 0.000000e+00 : f32
    %532 = vector.broadcast %cst_160 : f32 to vector<8x128xf32>
    %533 = arith.select %531, %530, %532 : vector<8x128xi1>, vector<8x128xf32>
    %534 = vector.broadcast %528 : f32 to vector<8x128xf32>
    %535 = arith.mulf %534, %533 : vector<8x128xf32>
    %536 = arith.addf %527, %535 : vector<8x128xf32>
    %c65 = arith.constant 65 : index
    %537 = memref.load %arg3[%c65] : memref<82xf32, #tpu.memory_space<smem>>
    %538 = vector.broadcast %537 : f32 to vector<8x128xf32>
    %539 = arith.addf %536, %538 : vector<8x128xf32>
    %cst_161 = arith.constant 0.000000e+00 : f32
    %540 = vector.broadcast %cst_161 : f32 to vector<8x128xf32>
    %541 = arith.maximumf %539, %540 : vector<8x128xf32>
    %cst_162 = arith.constant 0.000000e+00 : f32
    %542 = vector.broadcast %cst_162 : f32 to vector<8x128xf32>
    %543 = arith.maximumf %257, %542 : vector<8x128xf32>
    %cst_163 = arith.constant 1.000000e+00 : f32
    %544 = vector.broadcast %cst_163 : f32 to vector<8x128xf32>
    %545 = arith.subf %257, %544 : vector<8x128xf32>
    %cst_164 = arith.constant 0.000000e+00 : f32
    %546 = vector.broadcast %cst_164 : f32 to vector<8x128xf32>
    %547 = arith.maximumf %545, %546 : vector<8x128xf32>
    %548 = arith.subf %543, %547 : vector<8x128xf32>
    %c66 = arith.constant 66 : index
    %549 = memref.load %arg3[%c66] : memref<82xf32, #tpu.memory_space<smem>>
    %550 = vector.broadcast %549 : f32 to vector<8x128xf32>
    %551 = arith.mulf %550, %541 : vector<8x128xf32>
    %c69 = arith.constant 69 : index
    %552 = memref.load %arg3[%c69] : memref<82xf32, #tpu.memory_space<smem>>
    %553 = vector.broadcast %552 : f32 to vector<8x128xf32>
    %554 = arith.addf %551, %553 : vector<8x128xf32>
    %555 = arith.negf %554 : vector<8x128xf32>
    %556 = math.exp %555 : vector<8x128xf32>
    %cst_165 = arith.constant 1.000000e+00 : f32
    %557 = vector.broadcast %cst_165 : f32 to vector<8x128xf32>
    %558 = arith.addf %557, %556 : vector<8x128xf32>
    %559 = arith.divf %557, %558 : vector<8x128xf32>
    %560 = arith.mulf %559, %548 : vector<8x128xf32>
    %cst_166 = arith.constant 1.000000e+00 : f32
    %561 = vector.broadcast %cst_166 : f32 to vector<8x128xf32>
    %562 = arith.subf %561, %548 : vector<8x128xf32>
    %563 = arith.mulf %560, %562 : vector<8x128xf32>
    %564 = arith.addf %548, %563 : vector<8x128xf32>
    %c67 = arith.constant 67 : index
    %565 = memref.load %arg3[%c67] : memref<82xf32, #tpu.memory_space<smem>>
    %566 = vector.broadcast %565 : f32 to vector<8x128xf32>
    %567 = arith.mulf %566, %541 : vector<8x128xf32>
    %c70 = arith.constant 70 : index
    %568 = memref.load %arg3[%c70] : memref<82xf32, #tpu.memory_space<smem>>
    %569 = vector.broadcast %568 : f32 to vector<8x128xf32>
    %570 = arith.addf %567, %569 : vector<8x128xf32>
    %571 = arith.negf %570 : vector<8x128xf32>
    %572 = math.exp %571 : vector<8x128xf32>
    %cst_167 = arith.constant 1.000000e+00 : f32
    %573 = vector.broadcast %cst_167 : f32 to vector<8x128xf32>
    %574 = arith.addf %573, %572 : vector<8x128xf32>
    %575 = arith.divf %573, %574 : vector<8x128xf32>
    %576 = arith.mulf %575, %564 : vector<8x128xf32>
    %cst_168 = arith.constant 1.000000e+00 : f32
    %577 = vector.broadcast %cst_168 : f32 to vector<8x128xf32>
    %578 = arith.subf %577, %564 : vector<8x128xf32>
    %579 = arith.mulf %576, %578 : vector<8x128xf32>
    %580 = arith.addf %564, %579 : vector<8x128xf32>
    %c68 = arith.constant 68 : index
    %581 = memref.load %arg3[%c68] : memref<82xf32, #tpu.memory_space<smem>>
    %582 = vector.broadcast %581 : f32 to vector<8x128xf32>
    %583 = arith.mulf %582, %541 : vector<8x128xf32>
    %c71 = arith.constant 71 : index
    %584 = memref.load %arg3[%c71] : memref<82xf32, #tpu.memory_space<smem>>
    %585 = vector.broadcast %584 : f32 to vector<8x128xf32>
    %586 = arith.addf %583, %585 : vector<8x128xf32>
    %587 = arith.negf %586 : vector<8x128xf32>
    %588 = math.exp %587 : vector<8x128xf32>
    %cst_169 = arith.constant 1.000000e+00 : f32
    %589 = vector.broadcast %cst_169 : f32 to vector<8x128xf32>
    %590 = arith.addf %589, %588 : vector<8x128xf32>
    %591 = arith.divf %589, %590 : vector<8x128xf32>
    %592 = arith.mulf %591, %580 : vector<8x128xf32>
    %cst_170 = arith.constant 1.000000e+00 : f32
    %593 = vector.broadcast %cst_170 : f32 to vector<8x128xf32>
    %594 = arith.subf %593, %580 : vector<8x128xf32>
    %595 = arith.mulf %592, %594 : vector<8x128xf32>
    %596 = arith.addf %580, %595 : vector<8x128xf32>
    %cst_171 = arith.constant 0.000000e+00 : f32
    %597 = vector.broadcast %cst_171 : f32 to vector<8x128xf32>
    %c72 = arith.constant 72 : index
    %598 = memref.load %arg3[%c72] : memref<82xf32, #tpu.memory_space<smem>>
    %c1_i32_172 = arith.constant 1 : i32
    %599 = tpu.dynamic_rotate %596 by %c1_i32_172 dim 0 : vector<8x128xf32>, i32 -> vector<8x128xf32>
    %c1_i32_173 = arith.constant 1 : i32
    %600 = tpu.dynamic_rotate %599 by %c1_i32_173 dim 1 : vector<8x128xf32>, i32 -> vector<8x128xf32>
    %601 = arith.andi %23, %27 : vector<8x128xi1>
    %cst_174 = arith.constant 0.000000e+00 : f32
    %602 = vector.broadcast %cst_174 : f32 to vector<8x128xf32>
    %603 = arith.select %601, %600, %602 : vector<8x128xi1>, vector<8x128xf32>
    %604 = vector.broadcast %598 : f32 to vector<8x128xf32>
    %605 = arith.mulf %604, %603 : vector<8x128xf32>
    %606 = arith.addf %597, %605 : vector<8x128xf32>
    %c73 = arith.constant 73 : index
    %607 = memref.load %arg3[%c73] : memref<82xf32, #tpu.memory_space<smem>>
    %c1_i32_175 = arith.constant 1 : i32
    %608 = tpu.dynamic_rotate %596 by %c1_i32_175 dim 0 : vector<8x128xf32>, i32 -> vector<8x128xf32>
    %cst_176 = arith.constant 0.000000e+00 : f32
    %609 = vector.broadcast %cst_176 : f32 to vector<8x128xf32>
    %610 = arith.select %23, %608, %609 : vector<8x128xi1>, vector<8x128xf32>
    %611 = vector.broadcast %607 : f32 to vector<8x128xf32>
    %612 = arith.mulf %611, %610 : vector<8x128xf32>
    %613 = arith.addf %606, %612 : vector<8x128xf32>
    %c74 = arith.constant 74 : index
    %614 = memref.load %arg3[%c74] : memref<82xf32, #tpu.memory_space<smem>>
    %c1_i32_177 = arith.constant 1 : i32
    %615 = tpu.dynamic_rotate %596 by %c1_i32_177 dim 0 : vector<8x128xf32>, i32 -> vector<8x128xf32>
    %c127_i32_178 = arith.constant 127 : i32
    %616 = tpu.dynamic_rotate %615 by %c127_i32_178 dim 1 : vector<8x128xf32>, i32 -> vector<8x128xf32>
    %617 = arith.andi %23, %25 : vector<8x128xi1>
    %cst_179 = arith.constant 0.000000e+00 : f32
    %618 = vector.broadcast %cst_179 : f32 to vector<8x128xf32>
    %619 = arith.select %617, %616, %618 : vector<8x128xi1>, vector<8x128xf32>
    %620 = vector.broadcast %614 : f32 to vector<8x128xf32>
    %621 = arith.mulf %620, %619 : vector<8x128xf32>
    %622 = arith.addf %613, %621 : vector<8x128xf32>
    %c75 = arith.constant 75 : index
    %623 = memref.load %arg3[%c75] : memref<82xf32, #tpu.memory_space<smem>>
    %c1_i32_180 = arith.constant 1 : i32
    %624 = tpu.dynamic_rotate %596 by %c1_i32_180 dim 1 : vector<8x128xf32>, i32 -> vector<8x128xf32>
    %cst_181 = arith.constant 0.000000e+00 : f32
    %625 = vector.broadcast %cst_181 : f32 to vector<8x128xf32>
    %626 = arith.select %27, %624, %625 : vector<8x128xi1>, vector<8x128xf32>
    %627 = vector.broadcast %623 : f32 to vector<8x128xf32>
    %628 = arith.mulf %627, %626 : vector<8x128xf32>
    %629 = arith.addf %622, %628 : vector<8x128xf32>
    %c76 = arith.constant 76 : index
    %630 = memref.load %arg3[%c76] : memref<82xf32, #tpu.memory_space<smem>>
    %631 = vector.broadcast %630 : f32 to vector<8x128xf32>
    %632 = arith.mulf %631, %596 : vector<8x128xf32>
    %633 = arith.addf %629, %632 : vector<8x128xf32>
    %c77 = arith.constant 77 : index
    %634 = memref.load %arg3[%c77] : memref<82xf32, #tpu.memory_space<smem>>
    %c127_i32_182 = arith.constant 127 : i32
    %635 = tpu.dynamic_rotate %596 by %c127_i32_182 dim 1 : vector<8x128xf32>, i32 -> vector<8x128xf32>
    %cst_183 = arith.constant 0.000000e+00 : f32
    %636 = vector.broadcast %cst_183 : f32 to vector<8x128xf32>
    %637 = arith.select %25, %635, %636 : vector<8x128xi1>, vector<8x128xf32>
    %638 = vector.broadcast %634 : f32 to vector<8x128xf32>
    %639 = arith.mulf %638, %637 : vector<8x128xf32>
    %640 = arith.addf %633, %639 : vector<8x128xf32>
    %c78 = arith.constant 78 : index
    %641 = memref.load %arg3[%c78] : memref<82xf32, #tpu.memory_space<smem>>
    %c7_i32_184 = arith.constant 7 : i32
    %642 = tpu.dynamic_rotate %596 by %c7_i32_184 dim 0 : vector<8x128xf32>, i32 -> vector<8x128xf32>
    %c1_i32_185 = arith.constant 1 : i32
    %643 = tpu.dynamic_rotate %642 by %c1_i32_185 dim 1 : vector<8x128xf32>, i32 -> vector<8x128xf32>
    %644 = arith.andi %21, %27 : vector<8x128xi1>
    %cst_186 = arith.constant 0.000000e+00 : f32
    %645 = vector.broadcast %cst_186 : f32 to vector<8x128xf32>
    %646 = arith.select %644, %643, %645 : vector<8x128xi1>, vector<8x128xf32>
    %647 = vector.broadcast %641 : f32 to vector<8x128xf32>
    %648 = arith.mulf %647, %646 : vector<8x128xf32>
    %649 = arith.addf %640, %648 : vector<8x128xf32>
    %c79 = arith.constant 79 : index
    %650 = memref.load %arg3[%c79] : memref<82xf32, #tpu.memory_space<smem>>
    %c7_i32_187 = arith.constant 7 : i32
    %651 = tpu.dynamic_rotate %596 by %c7_i32_187 dim 0 : vector<8x128xf32>, i32 -> vector<8x128xf32>
    %cst_188 = arith.constant 0.000000e+00 : f32
    %652 = vector.broadcast %cst_188 : f32 to vector<8x128xf32>
    %653 = arith.select %21, %651, %652 : vector<8x128xi1>, vector<8x128xf32>
    %654 = vector.broadcast %650 : f32 to vector<8x128xf32>
    %655 = arith.mulf %654, %653 : vector<8x128xf32>
    %656 = arith.addf %649, %655 : vector<8x128xf32>
    %c80 = arith.constant 80 : index
    %657 = memref.load %arg3[%c80] : memref<82xf32, #tpu.memory_space<smem>>
    %c7_i32_189 = arith.constant 7 : i32
    %658 = tpu.dynamic_rotate %596 by %c7_i32_189 dim 0 : vector<8x128xf32>, i32 -> vector<8x128xf32>
    %c127_i32_190 = arith.constant 127 : i32
    %659 = tpu.dynamic_rotate %658 by %c127_i32_190 dim 1 : vector<8x128xf32>, i32 -> vector<8x128xf32>
    %660 = arith.andi %21, %25 : vector<8x128xi1>
    %cst_191 = arith.constant 0.000000e+00 : f32
    %661 = vector.broadcast %cst_191 : f32 to vector<8x128xf32>
    %662 = arith.select %660, %659, %661 : vector<8x128xi1>, vector<8x128xf32>
    %663 = vector.broadcast %657 : f32 to vector<8x128xf32>
    %664 = arith.mulf %663, %662 : vector<8x128xf32>
    %665 = arith.addf %656, %664 : vector<8x128xf32>
    %c81 = arith.constant 81 : index
    %666 = memref.load %arg3[%c81] : memref<82xf32, #tpu.memory_space<smem>>
    %667 = vector.broadcast %666 : f32 to vector<8x128xf32>
    %668 = arith.addf %665, %667 : vector<8x128xf32>
    %669 = arith.addf %668, %0 : vector<8x128xf32>
    %c0_192 = arith.constant 0 : index
    %c0_193 = arith.constant 0 : index
    %670 = vector.load %arg4[%c0_192, %c0_193] : memref<8x128xf32, #tpu.memory_space<vmem>>, vector<8x128xf32>
    tpu.vector_store %arg4[%c0_192, %c0_193], %669 {strides = array<i32>} : memref<8x128xf32, #tpu.memory_space<vmem>>, vector<8x128xf32>,
    %671 = arith.addf %668, %1 : vector<8x128xf32>
    %c0_194 = arith.constant 0 : index
    %c0_195 = arith.constant 0 : index
    %672 = vector.load %arg5[%c0_194, %c0_195] : memref<8x128xf32, #tpu.memory_space<vmem>>, vector<8x128xf32>
    tpu.vector_store %arg5[%c0_194, %c0_195], %671 {strides = array<i32>} : memref<8x128xf32, #tpu.memory_space<vmem>>, vector<8x128xf32>,
    return
  }
  func.func @transform_0(%arg0: i32) -> (i32, i32) {
    %c0_i32 = arith.constant 0 : i32
    %c0_i32_0 = arith.constant 0 : i32
    return %c0_i32, %arg0 : i32, i32
  }
  func.func @transform_1(%arg0: i32) -> (i32, i32) {
    %c0_i32 = arith.constant 0 : i32
    %c0_i32_0 = arith.constant 0 : i32
    return %c0_i32, %arg0 : i32, i32
  }
  func.func @transform_2(%arg0: i32) -> i32 {
    %c0_i32 = arith.constant 0 : i32
    %c0_i32_0 = arith.constant 0 : i32
    return %c0_i32 : i32
  }
  func.func @transform_3(%arg0: i32) -> (i32, i32) {
    %c0_i32 = arith.constant 0 : i32
    %c0_i32_0 = arith.constant 0 : i32
    return %c0_i32, %arg0 : i32, i32
  }
  func.func @transform_4(%arg0: i32) -> (i32, i32) {
    %c0_i32 = arith.constant 0 : i32
    %c0_i32_0 = arith.constant 0 : i32
    return %c0_i32, %arg0 : i32, i32
  }
}

</mosaic_0001>

<bundles_post_ra>
// kernel: tpu_custom_call.1
= control target key start
LH: loop header
LB: loop body
LE: loop exit
PB: predicated region body
PF: predicated region fallthrough
CT: control target
= control target key end

     0   :  { %10 = vsyncpa [#allocation3], 0  ;;  %s1407_s0 = inlined_call_operand.hbm [shape: f32[8,128], index: 0, kind: input, shape index: {}]   ;;  %s1408_s1 = inlined_call_operand.hbm [shape: f32[8,128], index: 1, kind: input, shape index: {}]   ;;  %s1409_s2 = inlined_call_operand.vmem [shape: f32[82], index: 2, kind: input, shape index: {}]   ;;  %s1410_s3 = inlined_call_operand.hbm [shape: f32[8,128], index: 3, kind: output, shape index: {0}]   ;;  %s1411_s4 = inlined_call_operand.hbm [shape: f32[8,128], index: 4, kind: output, shape index: {1}]  }
   0x1   :  { %11 = vsyncpa [#allocation7], 0 }
   0x2   :  { %12 = vsyncpa [#allocation5], 0 }
   0x3   :  { %13 = vsyncpa [#allocation4], 0 }
   0x4   :  { %14 = vsyncpa [#allocation11], 0  ;;  %s884_s15 = smov [#allocation2]   ;;  %s885_s17 = smov [#allocation6]  }
   0x5   :  { %s21_s16 = sshll.u32 %s884_s15, 4  ;;  %s31_s18 = sshll.u32 %s885_s17, 4  ;;  %s22_s16 = int_to_ptr.vmem [resolvable:$true] %s21_s16  ;;  %s32_s18 = int_to_ptr.vmem [resolvable:$true] %s31_s18 }
   0x6   :  { %s774_s21 = scalar_lea.hbm %s1407_s0, 128 }
   0x7   :  { %p775_p0 = scmp.ne.s32.totalorder %s1407_s0, %s774_s21  ;;  %p778_p1 = scmp.lt.u32.totalorder %s774_s21, %s1407_s0 }
   0x9   :  { %p780_p2 = pnand %p778_p1, %p775_p0 }
   0xb   :  { %783 = shalt.err (!%p780_p2)
}
   0xc   :  { %s784_s26 = scalar_lea.vmem %s22_s16, 128  ;;  %p789_p4 = scmp.lt.s32.totalorder %s22_s16, %s22_s16 }
   0xd   :  { %p785_p3 = scmp.ne.s32.totalorder %s22_s16, %s784_s26  ;;  %p790_p5 = scmp.lt.s32.totalorder %s784_s26, %s784_s26 }
   0xf   :  { %p791_p6 = por %p790_p5, %p789_p4 }
  0x11   :  { %p792_p7 = pnand %p791_p6, %p785_p3 }
  0x13   :  { %795 = shalt.err (!%p792_p7)
}
  0x14   :  { %24 = dma.hbm_to_vmem [thread:$0]  %s1407_s0, 128, %s22_s16, [#allocation3]  }
  0x15   :  { %s796_s5 = scalar_lea.hbm %s1408_s1, 128 }
  0x16   :  { %p797_p8 = scmp.ne.s32.totalorder %s1408_s1, %s796_s5  ;;  %p800_p9 = scmp.lt.u32.totalorder %s796_s5, %s1408_s1 }
  0x18   :  { %p802_p10 = pnand %p800_p9, %p797_p8 }
  0x1a   :  { %805 = shalt.err (!%p802_p10)
}
  0x1b   :  { %s806_s10 = scalar_lea.vmem %s32_s18, 128  ;;  %p811_p12 = scmp.lt.s32.totalorder %s32_s18, %s32_s18 }
  0x1c   :  { %p807_p11 = scmp.ne.s32.totalorder %s32_s18, %s806_s10  ;;  %p812_p13 = scmp.lt.s32.totalorder %s806_s10, %s806_s10 }
  0x1e   :  { %p813_p0 = por %p812_p13, %p811_p12 }
  0x20   :  { %p814_p1 = pnand %p813_p0, %p807_p11 }
  0x22   :  { %817 = shalt.err (!%p814_p1)
}
  0x23   :  { %34 = dma.hbm_to_vmem [thread:$0]  %s1408_s1, 128, %s32_s18, [#allocation7]  }
  0x24   :  { %s41_s14 = sshll.u32 %s1409_s2, 4  ;;  %s42_s14 = int_to_ptr.vmem [resolvable:$true] %s41_s14 }
  0x25   :  { %s818_s15 = scalar_lea.vmem %s42_s14, 16  ;;  %p823_p3 = scmp.lt.s32.totalorder %s42_s14, %s42_s14 }
  0x26   :  { %p819_p2 = scmp.ne.s32.totalorder %s42_s14, %s818_s15  ;;  %p824_p4 = scmp.lt.s32.totalorder %s818_s15, %s818_s15 }
  0x28   :  { %p825_p5 = por %p824_p4, %p823_p3 }
  0x2a   :  { %p826_p6 = pnand %p825_p5, %p819_p2 }
  0x2c   :  { %829 = shalt.err (!%p826_p6)
}
  0x2d   :  { %s886_s16 = smov [#allocation8]  }
  0x2e   :  { %44 = dma.vmem_to_smem %s42_s14, 16, %s886_s16, [#allocation5]  }
  0x2f   :  { %874 = dma.done.wait [#allocation3], 128  }
  0x30   :  { %875 = vsyncadd [#allocation3], 4294967168 }
  0x31   :  { %876 = dma.done.wait [#allocation7], 128  }
  0x32   :  { %877 = vsyncadd [#allocation7], 4294967168 }
  0x33   :  { %878 = dma.done.wait [#allocation5], 16  }
  0x34   :  { %879 = vsyncadd [#allocation5], 4294967280 }
  0x35   :  { %54 = sfence }
  0x36   :  { %v945_v0 = vld [vmem:[#allocation6] sm:$0xff]  ;;  %v947_v1 = vld [vmem:[#allocation2] sm:$0xff]  ;;  %s887_s1 = smov 127   ;;  %s888_s2 = smov 1   ;;  %v57_v6 = vlaneseq }
  0x37   :  { %v144_v2 = vrot.slane %v945_v0, 7  ;;  %v82_v3 = vrot.slane %v947_v1, 7  ;;  %v964_v4 = vrot.slane %v947_v1, 1  ;;  %v967_v5 = vrot.slane %v945_v0, 1  ;;  %s674_s17 = sld [smem:[#allocation8 + $0x9]]  ;;  %s675_s18 = sld [smem:[#allocation8 + $0xa]] }
  0x38   :  { %v60_v7 = vand.u32 127, %v57_v6  ;;  %v977_v8 = vshrl.u32 %v57_v6, 7  ;;  %s981_s19 = sld [smem:[#allocation8 + $0x1]]  ;;  %s983_s20 = sld [smem:[#allocation8 + $0xb]] }
  0x39   :  { %157 = vrot.lane.b32.xlu1 %v144_v2, %s887_s1  ;;  %145 = vrot.lane.b32.xlu0 %v144_v2, %s888_s2  ;;  %s987_s21 = sld [smem:[#allocation8 + $0x2]]  ;;  %s989_s22 = sld [smem:[#allocation8]] }
  0x3a   :  { %v979_v9 = vand.u32 7, %v60_v7  ;;  %vm74_vm0 = vcmp.ge.s32.totalorder %v977_v8, 1  ;;  %s992_s23 = sld [smem:[#allocation8 + $0x4]]  ;;  %s994_s24 = sld [smem:[#allocation8 + $0xd]]  ;;  %vm73_vm5 = vcmp.lt.s32.totalorder %v977_v8, 7  ;;  %vm78_vm9 = vcmp.ge.s32.totalorder %v977_v8, 2 }
  0x3b   :  { %v152_v13 = vsel %vm74_vm0, %v144_v2, 0.0  ;;  %s1006_s25 = sld [smem:[#allocation8 + $0x3]]  ;;  %s1008_s26 = sld [smem:[#allocation8 + $0xc]]  ;;  %v91_v19 = vsel %vm74_vm0, %v82_v3, 0.0  ;;  %v131_v56 = vsel %vm73_vm5, %v964_v4, 0.0  ;;  %v190_v57 = vsel %vm73_vm5, %v967_v5, 0.0 }
  0x3c   :  { %vm76_vm1 = vcmp.ge.s32.totalorder %v979_v9, 1  ;;  %vm75_vm2 = vcmp.lt.s32.totalorder %v979_v9, 7  ;;  %s1028_s27 = sld [smem:[#allocation8 + $0x5]]  ;;  %s1030_s28 = sld [smem:[#allocation8 + $0xe]]  ;;  %vm80_vm8 = vcmp.ge.s32.totalorder %v979_v9, 2  ;;  %vm79_vm12 = vcmp.lt.s32.totalorder %v979_v9, 6 }
  0x3d   :  { %96 = vrot.lane.b32.xlu1 %v82_v3, %s887_s1  ;;  %83 = vrot.lane.b32.xlu0 %v82_v3, %s888_s2  ;;  %vm1000_vm3 = vmand %vm74_vm0, %vm76_vm1  ;;  %v148_v11 = vstv %s674_s17  ;;  %v153_v12 = vstv %s675_s18  ;;  %s1038_s29 = sld [smem:[#allocation8 + $0x7]]  ;;  %s1040_s30 = sld [smem:[#allocation8 + $0x10]] }
  0x3e   :  { %vm1014_vm4 = vmand %vm74_vm0, %vm75_vm2  ;;  %v92_v18 = vstv %s981_s19  ;;  %v154_v21 = vmul.f32 %v153_v12, %v152_v13  ;;  %v160_v22 = vstv %s983_s20  ;;  %s1044_s5 = sld [smem:[#allocation8 + $0x6]]  ;;  %s1046_s6 = sld [smem:[#allocation8 + $0xf]] }
  0x3f   :  { %v100_v24 = vstv %s987_s21  ;;  %v87_v25 = vstv %s989_s22  ;;  %v93_v28 = vmul.f32 %v92_v18, %v91_v19  ;;  %s1057_s7 = sld [smem:[#allocation8 + $0x8]]  ;;  %s1059_s8 = sld [smem:[#allocation8 + $0x11]]  ;;  %vm1077_vm6 = vmand %vm73_vm5, %vm76_vm1 }
  0x40   :  { %v111_v31 = vstv %s992_s23  ;;  %v171_v32 = vstv %s994_s24  ;;  %s683_s9 = sld [smem:[#allocation8 + $0x12]]  ;;  %vm1091_vm7 = vmand %vm73_vm5, %vm75_vm2  ;;  %s684_s10 = sld [smem:[#allocation8 + $0x13]] }
  0x41   :  { %104 = vrot.lane.b32.xlu1 %v947_v1, %s888_s2  ;;  %164 = vrot.lane.b32.xlu0 %v945_v0, %s888_s2  ;;  %v107_v37 = vstv %s1006_s25  ;;  %v167_v38 = vstv %s1008_s26  ;;  %v112_v44 = vmul.f32 %v111_v31, %v947_v1  ;;  %v172_v45 = vmul.f32 %v171_v32, %v945_v0  ;;  %s685_s0 = sld [smem:[#allocation8 + $0x14]]  ;;  %s686_s11 = sld [smem:[#allocation8 + $0x15]]  ;;  %vm284_vm10 = vmand %vm78_vm9, %vm76_vm1 }
  0x42   :  { %v118_v50 = vstv %s1028_s27  ;;  %v178_v51 = vstv %s1030_s28  ;;  %s687_s12 = sld [smem:[#allocation8 + $0x16]]  ;;  %s688_s13 = sld [smem:[#allocation8 + $0x17]]  ;;  %vm276_vm11 = vmand %vm78_vm9, %vm80_vm8 }
  0x43   :  { %v132_v60 = vstv %s1038_s29  ;;  %v191_v61 = vstv %s1040_s30  ;;  %s689_s14 = sld [smem:[#allocation8 + $0x18]]  ;;  %s690_s15 = sld [smem:[#allocation8 + $0x19]]  ;;  %vm1182_vm13 = vmand %vm78_vm9, %vm79_vm12 }
  0x44   :  { %v127_v3 = vstv %s1044_s5  ;;  %v133_v12 = vmul.f32 %v132_v60, %v131_v56  ;;  %v192_v13 = vmul.f32 %v191_v61, %v190_v57  ;;  %s691_s16 = sld [smem:[#allocation8 + $0x1a]]  ;;  %s692_s17 = sld [smem:[#allocation8 + $0x1b]]  ;;  %vm297_vm14 = vmand %vm78_vm9, %vm75_vm2 }
  0x45   :  { %115 = vrot.lane.b32.xlu1 %v947_v1, %s887_s1  ;;  %175 = vrot.lane.b32.xlu0 %v945_v0, %s887_s1  ;;  %s693_s18 = sld [smem:[#allocation8 + $0x1c]]  ;;  %s694_s19 = sld [smem:[#allocation8 + $0x1d]]  ;;  %vm314_vm15 = vmand %vm74_vm0, %vm80_vm8 }
  0x46   :  { %v202_v32 = vstv %s683_s9  ;;  %s889_s20 = smov 2   ;;  %s890_s21 = smov 126  }
  0x47   :  { %s696_s22 = sld [smem:[#allocation8 + $0x1f]]  ;;  %s695_s23 = sld [smem:[#allocation8 + $0x1e]] }
  0x48   :  { %s697_s24 = sld [smem:[#allocation8 + $0x20]]  ;;  %s1162_s25 = sld [smem:[#allocation8 + $0x21]] }
  0x49   :  { %123 = vrot.lane.b32.xlu1 %v964_v4, %s888_s2  ;;  %183 = vrot.lane.b32.xlu0 %v967_v5, %s888_s2  ;;  %s1169_s26 = sld [smem:[#allocation8 + $0x22]]  ;;  %s1176_s27 = sld [smem:[#allocation8 + $0x23]] }
  0x4a   :  { %s1188_s28 = sld [smem:[#allocation8 + $0x24]]  ;;  %s1195_s29 = sld [smem:[#allocation8 + $0x25]] }
  0x4b   :  { %s1200_s30 = sld [smem:[#allocation8 + $0x26]]  ;;  %s1207_s5 = sld [smem:[#allocation8 + $0x27]] }
  0x4c   :  { %s1234_s9 = sld [smem:[#allocation8 + $0x2b]] }
  0x4d   :  { %136 = vrot.lane.b32.xlu1 %v964_v4, %s887_s1  ;;  %195 = vrot.lane.b32.xlu0 %v967_v5, %s887_s1  ;;  %v186_v4 = vstv %s1046_s6  ;;  %s1212_s6 = sld [smem:[#allocation8 + $0x28]] }
  0xab   :  { %v158_v15 = vpop.permute.xlu1 %157  ;;  %v146_v16 = vpop.permute.xlu0 %145 }
  0xac   :  { %v147_v17 = vsel %vm1000_vm3, %v146_v16, 0.0  ;;  %v159_v23 = vsel %vm1014_vm4, %v158_v15, 0.0 }
  0xad   :  { %v149_v20 = vmul.f32 %v148_v11, %v147_v17  ;;  %v161_v33 = vmul.f32 %v160_v22, %v159_v23 }
  0xaf   :  { %v97_v26 = vpop.permute.xlu1 %96  ;;  %v84_v27 = vpop.permute.xlu0 %83  ;;  %v155_v34 = vadd.f32 %v154_v21, %v149_v20  ;;  %v140_v20 = vstv %s1057_s7  ;;  %v198_v21 = vstv %s1059_s8  ;;  %s1218_s7 = sld [smem:[#allocation8 + $0x29]]  ;;  %s707_s8 = sld [smem:[#allocation8 + $0x2a]] }
  0xb0   :  { %v99_v29 = vsel %vm1014_vm4, %v97_v26, 0.0  ;;  %v86_v30 = vsel %vm1000_vm3, %v84_v27, 0.0 }
  0xb1   :  { %v101_v35 = vmul.f32 %v100_v24, %v99_v29  ;;  %v88_v36 = vmul.f32 %v87_v25, %v86_v30  ;;  %v162_v48 = vadd.f32 %v161_v33, %v155_v34 }
  0xb3   :  { %v94_v39 = vadd.f32 %v93_v28, %v88_v36  ;;  %v105_v40 = vpop.permute.xlu1 %104  ;;  %v165_v41 = vpop.permute.xlu0 %164 }
  0xb4   :  { %v106_v42 = vsel %vm76_vm1, %v105_v40, 0.0  ;;  %v166_v43 = vsel %vm76_vm1, %v165_v41, 0.0 }
  0xb5   :  { %v102_v46 = vadd.f32 %v101_v35, %v94_v39  ;;  %v108_v47 = vmul.f32 %v107_v37, %v106_v42  ;;  %v168_v49 = vmul.f32 %v167_v38, %v166_v43  ;;  %v208_v37 = vstv %s684_s10  ;;  %s709_s10 = sld [smem:[#allocation8 + $0x2c]] }
  0xb7   :  { %v109_v52 = vadd.f32 %v108_v47, %v102_v46  ;;  %v169_v53 = vadd.f32 %v168_v49, %v162_v48  ;;  %v116_v54 = vpop.permute.xlu1 %115  ;;  %v176_v55 = vpop.permute.xlu0 %175  ;;  %v228_v49 = vstv %s687_s12  ;;  %s1249_s12 = sld [smem:[#allocation8 + $0x2f]] }
  0xb8   :  { %v117_v58 = vsel %vm75_vm2, %v116_v54, 0.0  ;;  %v177_v59 = vsel %vm75_vm2, %v176_v55, 0.0  ;;  %v235_v54 = vstv %s688_s13  ;;  %s1262_s13 = sld [smem:[#allocation8 + $0x30]] }
  0xb9   :  { %v113_v62 = vadd.f32 %v112_v44, %v109_v52  ;;  %v119_v63 = vmul.f32 %v118_v50, %v117_v58  ;;  %v173_v0 = vadd.f32 %v172_v45, %v169_v53  ;;  %v179_v1 = vmul.f32 %v178_v51, %v177_v59 }
  0xba   :  { %v216_v44 = vstv %s685_s0  ;;  %v221_v45 = vstv %s686_s11  ;;  %v239_v59 = vstv %s689_s14  ;;  %s1242_s0 = sld [smem:[#allocation8 + $0x2d]]  ;;  %s1244_s11 = sld [smem:[#allocation8 + $0x2e]] }
  0xbb   :  { %v124_v5 = vpop.permute.xlu1 %123  ;;  %v184_v6 = vpop.permute.xlu0 %183  ;;  %v120_v15 = vadd.f32 %v119_v63, %v113_v62  ;;  %v180_v16 = vadd.f32 %v179_v1, %v173_v0  ;;  %v246_v63 = vstv %s690_s15  ;;  %s1267_s14 = sld [smem:[#allocation8 + $0x31]]  ;;  %s1272_s15 = sld [smem:[#allocation8 + $0x32]] }
  0xbc   :  { %v126_v7 = vsel %vm1077_vm6, %v124_v5, 0.0  ;;  %v185_v11 = vsel %vm1077_vm6, %v184_v6, 0.0  ;;  %v254_v5 = vstv %s691_s16  ;;  %s1278_s16 = sld [smem:[#allocation8 + $0x33]] }
  0xbd   :  { %v128_v17 = vmul.f32 %v127_v3, %v126_v7  ;;  %v187_v18 = vmul.f32 %v186_v4, %v185_v11 }
  0xbf   :  { %v129_v22 = vadd.f32 %v128_v17, %v120_v15  ;;  %v188_v23 = vadd.f32 %v187_v18, %v180_v16  ;;  %v137_v24 = vpop.permute.xlu1 %136  ;;  %v196_v25 = vpop.permute.xlu0 %195  ;;  %v259_v15 = vstv %s692_s17  ;;  %v266_v18 = vstv %s693_s18  ;;  %s1292_s17 = sld [smem:[#allocation8 + $0x34]]  ;;  %s718_s18 = sld [smem:[#allocation8 + $0x35]] }
  0xc0   :  { %v139_v26 = vsel %vm1091_vm7, %v137_v24, 0.0  ;;  %v197_v27 = vsel %vm1091_vm7, %v196_v25, 0.0  ;;  %v270_v25 = vstv %s694_s19  ;;  %s719_s19 = sld [smem:[#allocation8 + $0x36]] }
  0xc1   :  { %v134_v28 = vadd.f32 %v133_v12, %v129_v22  ;;  %v141_v29 = vmul.f32 %v140_v20, %v139_v26  ;;  %v193_v30 = vadd.f32 %v192_v13, %v188_v23  ;;  %v199_v31 = vmul.f32 %v198_v21, %v197_v27 }
  0xc3   :  { %v200_v33 = vadd.f32 %v199_v31, %v193_v30  ;;  %v142_v34 = vadd.f32 %v141_v29, %v134_v28 }
  0xc5   :  { %v203_v35 = vadd.f32 %v202_v32, %v200_v33  ;;  %v286_v32 = vstv %s696_s22  ;;  %v278_v33 = vstv %s695_s23  ;;  %s722_s22 = sld [smem:[#allocation8 + $0x39]]  ;;  %s723_s23 = sld [smem:[#allocation8 + $0x3a]] }
  0xc7   :  { %v204_v36 = vadd.f32 %v203_v35, %v142_v34 }
  0xc9   :  { %v207_v38 = vmin.f32 %v204_v36, 0.0  ;;  %v206_v39 = vmax.f32 %v204_v36, 0.0 }
  0xcb   :  { %v209_v40 = vmul.f32 %v208_v37, %v207_v38  ;;  %v368_v38 = vstv %s1234_s9  ;;  %s738_s9 = sld [smem:[#allocation8 + $0x44]] }
  0xcd   :  { %v210_v41 = vadd.f32 %v209_v40, %v206_v39  ;;  %v291_v39 = vstv %s697_s24  ;;  %s724_s24 = sld [smem:[#allocation8 + $0x3b]] }
  0xcf   :  { %v212_v42 = vrot.slane %v210_v41, 7  ;;  %v250_v43 = vrot.slane %v210_v41, 1  ;;  %v240_v1 = vmul.f32 %v239_v59, %v210_v41 }
  0xd1   :  { %225 = vrot.lane.b32.xlu1 %v212_v42, %s887_s1  ;;  %213 = vrot.lane.b32.xlu0 %v212_v42, %s888_s2  ;;  %v220_v46 = vsel %vm74_vm0, %v212_v42, 0.0  ;;  %v258_v13 = vsel %vm73_vm5, %v250_v43, 0.0 }
  0xd2   :  { %v222_v53 = vmul.f32 %v221_v45, %v220_v46  ;;  %v260_v21 = vmul.f32 %v259_v15, %v258_v13  ;;  %v343_v15 = vstv %s1207_s5  ;;  %s732_s5 = sld [smem:[#allocation8 + $0x42]] }
  0xd5   :  { %243 = vrot.lane.b32.xlu1 %v210_v41, %s887_s1  ;;  %232 = vrot.lane.b32.xlu0 %v210_v41, %s888_s2 }
  0xd9   :  { %263 = vrot.lane.b32.xlu1 %v250_v43, %s887_s1  ;;  %251 = vrot.lane.b32.xlu0 %v250_v43, %s888_s2  ;;  %v299_v43 = vstv %s1162_s25  ;;  %s725_s25 = sld [smem:[#allocation8 + $0x3c]] }
 0x143   :  { %v226_v47 = vpop.permute.xlu1 %225  ;;  %v214_v48 = vpop.permute.xlu0 %213 }
 0x144   :  { %v227_v50 = vsel %vm1014_vm4, %v226_v47, 0.0  ;;  %v215_v51 = vsel %vm1000_vm3, %v214_v48, 0.0  ;;  %v307_v48 = vstv %s1169_s26  ;;  %s726_s26 = sld [smem:[#allocation8 + $0x3d]] }
 0x145   :  { %v217_v52 = vmul.f32 %v216_v44, %v215_v51  ;;  %v229_v55 = vmul.f32 %v228_v49, %v227_v50 }
 0x147   :  { %v223_v56 = vadd.f32 %v222_v53, %v217_v52  ;;  %v244_v57 = vpop.permute.xlu1 %243  ;;  %v233_v58 = vpop.permute.xlu0 %232  ;;  %v316_v53 = vstv %s1176_s27  ;;  %s727_s27 = sld [smem:[#allocation8 + $0x3e]] }
 0x148   :  { %v234_v60 = vsel %vm76_vm1, %v233_v58, 0.0  ;;  %v245_v0 = vsel %vm75_vm2, %v244_v57, 0.0  ;;  %v323_v58 = vstv %s1188_s28  ;;  %s728_s28 = sld [smem:[#allocation8 + $0x3f]] }
 0x149   :  { %v230_v61 = vadd.f32 %v229_v55, %v223_v56  ;;  %v236_v62 = vmul.f32 %v235_v54, %v234_v60  ;;  %v247_v7 = vmul.f32 %v246_v63, %v245_v0  ;;  %v328_v0 = vstv %s1195_s29  ;;  %s729_s29 = sld [smem:[#allocation8 + $0x40]] }
 0x14b   :  { %v237_v3 = vadd.f32 %v236_v62, %v230_v61  ;;  %v252_v4 = vpop.permute.xlu0 %251  ;;  %v264_v12 = vpop.permute.xlu1 %263 }
 0x14c   :  { %v253_v6 = vsel %vm1077_vm6, %v252_v4, 0.0  ;;  %v265_v20 = vsel %vm1091_vm7, %v264_v12, 0.0 }
 0x14d   :  { %v241_v11 = vadd.f32 %v240_v1, %v237_v3  ;;  %v255_v17 = vmul.f32 %v254_v5, %v253_v6  ;;  %v267_v23 = vmul.f32 %v266_v18, %v265_v20 }
 0x14f   :  { %v248_v16 = vadd.f32 %v247_v7, %v241_v11  ;;  %v335_v7 = vstv %s1200_s30  ;;  %s730_s30 = sld [smem:[#allocation8 + $0x41]] }
 0x151   :  { %v256_v22 = vadd.f32 %v255_v17, %v248_v16 }
 0x153   :  { %v261_v24 = vadd.f32 %v260_v21, %v256_v22  ;;  %v350_v22 = vstv %s1212_s6  ;;  %s735_s6 = sld [smem:[#allocation8 + $0x43]] }
 0x155   :  { %v268_v26 = vadd.f32 %v267_v23, %v261_v24 }
 0x157   :  { %v1123_v27 = vadd.f32 %v270_v25, %v268_v26  ;;  %v357_v26 = vstv %s1218_s7  ;;  %s733_s7 = sld [smem:[#allocation8 + $0x45]] }
 0x159   :  { %v273_v28 = vrot.slane %v1123_v27, 6  ;;  %v1129_v29 = vrot.slane %v1123_v27, 7  ;;  %v1144_v30 = vrot.slane %v1123_v27, 1  ;;  %v1153_v31 = vrot.slane %v1123_v27, 2 }
 0x15b   :  { %282 = vrot.lane.b32.xlu1 %v273_v28, %s888_s2  ;;  %274 = vrot.lane.b32.xlu0 %v273_v28, %s889_s20  ;;  %v290_v40 = vsel %vm78_vm9, %v273_v28, 0.0  ;;  %v327_v63 = vsel %vm74_vm0, %v1129_v29, 0.0  ;;  %vm1224_vm9 = vmand %vm74_vm0, %vm79_vm12 }
 0x15c   :  { %v292_v47 = vmul.f32 %v291_v39, %v290_v40  ;;  %v329_v13 = vmul.f32 %v328_v0, %v327_v63  ;;  %v403_v0 = vstv %s1262_s13  ;;  %s744_s13 = sld [smem:[#allocation8 + $0x4b]] }
 0x15f   :  { %303 = vrot.lane.b32.xlu1 %v273_v28, %s890_s21  ;;  %295 = vrot.lane.b32.xlu0 %v273_v28, %s887_s1 }
 0x163   :  { %320 = vrot.lane.b32.xlu1 %v1129_v29, %s888_s2  ;;  %312 = vrot.lane.b32.xlu0 %v1129_v29, %s889_s20 }
 0x167   :  { %339 = vrot.lane.b32.xlu1 %v1129_v29, %s890_s21  ;;  %332 = vrot.lane.b32.xlu0 %v1129_v29, %s887_s1 }
 0x16b   :  { %354 = vrot.lane.b32.xlu1 %v1123_v27, %s888_s2  ;;  %347 = vrot.lane.b32.xlu0 %v1123_v27, %s889_s20 }
 0x16f   :  { %372 = vrot.lane.b32.xlu1 %v1123_v27, %s890_s21  ;;  %365 = vrot.lane.b32.xlu0 %v1123_v27, %s887_s1 }
 0x173   :  { %388 = vrot.lane.b32.xlu1 %v1144_v30, %s888_s2  ;;  %380 = vrot.lane.b32.xlu0 %v1144_v30, %s889_s20 }
 0x177   :  { %407 = vrot.lane.b32.xlu1 %v1144_v30, %s890_s21  ;;  %400 = vrot.lane.b32.xlu0 %v1144_v30, %s887_s1 }
 0x17b   :  { %424 = vrot.lane.b32.xlu1 %v1153_v31, %s888_s2  ;;  %416 = vrot.lane.b32.xlu0 %v1153_v31, %s889_s20  ;;  %s720_s20 = sld [smem:[#allocation8 + $0x37]] }
 0x17f   :  { %445 = vrot.lane.b32.xlu1 %v1153_v31, %s890_s21  ;;  %437 = vrot.lane.b32.xlu0 %v1153_v31, %s887_s1  ;;  %s721_s21 = sld [smem:[#allocation8 + $0x38]] }
 0x1cd   :  { %v283_v34 = vpop.permute.xlu1 %282  ;;  %v275_v35 = vpop.permute.xlu0 %274 }
 0x1ce   :  { %v285_v36 = vsel %vm284_vm10, %v283_v34, 0.0  ;;  %v277_v37 = vsel %vm276_vm11, %v275_v35, 0.0  ;;  %v361_v35 = vstv %s707_s8  ;;  %vm1256_vm10 = vmand %vm73_vm5, %vm80_vm8  ;;  %s736_s8 = sld [smem:[#allocation8 + $0x46]] }
 0x1cf   :  { %v287_v41 = vmul.f32 %v286_v32, %v285_v36  ;;  %v279_v42 = vmul.f32 %v278_v33, %v277_v37  ;;  %vm1284_vm11 = vmand %vm73_vm5, %vm79_vm12 }
 0x1d1   :  { %v288_v44 = vadd.f32 %v287_v41, %v279_v42  ;;  %v304_v45 = vpop.permute.xlu1 %303  ;;  %v296_v46 = vpop.permute.xlu0 %295  ;;  %v362_v41 = vmul.f32 %v361_v35, %v1123_v27  ;;  %v441_v35 = vstv %s718_s18  ;;  %s891_s18 = smov [#allocation9]  }
 0x1d2   :  { %v306_v49 = vsel %vm1182_vm13, %v304_v45, 0.0  ;;  %v298_v50 = vsel %vm297_vm14, %v296_v46, 0.0  ;;  %v375_v45 = vstv %s709_s10  ;;  %vm77_vm13 = vcmp.lt.s32.totalorder %v977_v8, 6  ;;  %s739_s10 = sld [smem:[#allocation8 + $0x47]]  ;;  %v772_v8 = vld [vmem:[#allocation2] sm:$0xff] }
 0x1d3   :  { %v293_v51 = vadd.f32 %v292_v47, %v288_v44  ;;  %v300_v52 = vmul.f32 %v299_v43, %v298_v50  ;;  %v308_v54 = vmul.f32 %v307_v48, %v306_v49  ;;  %v384_v49 = vstv %s1242_s0  ;;  %vm1298_vm14 = vmand %vm77_vm13, %vm80_vm8  ;;  %s741_s0 = sld [smem:[#allocation8 + $0x48]] }
 0x1d5   :  { %v301_v55 = vadd.f32 %v300_v52, %v293_v51  ;;  %v321_v56 = vpop.permute.xlu1 %320  ;;  %v313_v57 = vpop.permute.xlu0 %312 }
 0x1d6   :  { %v322_v59 = vsel %vm1000_vm3, %v321_v56, 0.0  ;;  %v315_v60 = vsel %vm314_vm15, %v313_v57, 0.0  ;;  %vm1309_vm15 = vmand %vm77_vm13, %vm76_vm1 }
 0x1d7   :  { %v309_v61 = vadd.f32 %v308_v54, %v301_v55  ;;  %v317_v62 = vmul.f32 %v316_v53, %v315_v60  ;;  %v324_v1 = vmul.f32 %v323_v58, %v322_v59  ;;  %v391_v54 = vstv %s1244_s11  ;;  %s742_s11 = sld [smem:[#allocation8 + $0x49]] }
 0x1d8   :  { %v395_v59 = vsel %vm73_vm5, %v1144_v30, 0.0  ;;  %v396_v60 = vstv %s1249_s12  ;;  %s743_s12 = sld [smem:[#allocation8 + $0x4a]] }
 0x1d9   :  { %v318_v3 = vadd.f32 %v317_v62, %v309_v61  ;;  %v340_v5 = vpop.permute.xlu1 %339  ;;  %v333_v6 = vpop.permute.xlu0 %332 }
 0x1da   :  { %v334_v11 = vsel %vm1014_vm4, %v333_v6, 0.0  ;;  %v342_v16 = vsel %vm1224_vm9, %v340_v5, 0.0  ;;  %v411_v6 = vstv %s1267_s14  ;;  %vm447_vm9 = vmand %vm77_vm13, %vm79_vm12  ;;  %s745_s14 = sld [smem:[#allocation8 + $0x4c]] }
 0x1db   :  { %v325_v12 = vadd.f32 %v324_v1, %v318_v3  ;;  %v336_v18 = vmul.f32 %v335_v7, %v334_v11  ;;  %v344_v24 = vmul.f32 %v343_v15, %v342_v16  ;;  %v397_v3 = vmul.f32 %v396_v60, %v395_v59 }
 0x1dc   :  { %v420_v16 = vstv %s1272_s15  ;;  %v480_v60 = vstv %s724_s24  ;;  %s746_s15 = sld [smem:[#allocation8 + $0x4d]] }
 0x1dd   :  { %v330_v17 = vadd.f32 %v329_v13, %v325_v12  ;;  %v355_v20 = vpop.permute.xlu1 %354  ;;  %v348_v21 = vpop.permute.xlu0 %347  ;;  %v499_v13 = vstv %s727_s27 }
 0x1de   :  { %v349_v23 = vsel %vm80_vm8, %v348_v21, 0.0  ;;  %v356_v28 = vsel %vm76_vm1, %v355_v20, 0.0  ;;  %v428_v21 = vstv %s1278_s16  ;;  %vm1323_vm8 = vmand %vm77_vm13, %vm75_vm2  ;;  %s749_s16 = sld [smem:[#allocation8 + $0x50]] }
 0x1df   :  { %v337_v25 = vadd.f32 %v336_v18, %v330_v17  ;;  %v351_v32 = vmul.f32 %v350_v22, %v349_v23  ;;  %v358_v36 = vmul.f32 %v357_v26, %v356_v28  ;;  %v432_v28 = vsel %vm77_vm13, %v1153_v31, 0.0 }
 0x1e1   :  { %v345_v29 = vadd.f32 %v344_v24, %v337_v25  ;;  %v373_v33 = vpop.permute.xlu1 %372  ;;  %v366_v34 = vpop.permute.xlu0 %365 }
 0x1e2   :  { %v367_v39 = vsel %vm75_vm2, %v366_v34, 0.0  ;;  %v374_v46 = vsel %vm79_vm12, %v373_v33, 0.0 }
 0x1e3   :  { %v352_v37 = vadd.f32 %v351_v32, %v345_v29  ;;  %v369_v48 = vmul.f32 %v368_v38, %v367_v39  ;;  %v376_v51 = vmul.f32 %v375_v45, %v374_v46  ;;  %v433_v29 = vstv %s1292_s17  ;;  %s750_s17 = sld [smem:[#allocation8 + $0x51]] }
 0x1e4   :  { %v434_v38 = vmul.f32 %v433_v29, %v432_v28  ;;  %v449_v39 = vstv %s719_s19  ;;  %s641_s19 = sshll.u32 %s891_s18, 4  ;;  %s642_s19 = int_to_ptr.vmem [resolvable:$true] %s641_s19 }
 0x1e5   :  { %v359_v40 = vadd.f32 %v358_v36, %v352_v37  ;;  %v389_v42 = vpop.permute.xlu1 %388  ;;  %v381_v44 = vpop.permute.xlu0 %380  ;;  %p835_p8 = scmp.lt.s32.totalorder %s642_s19, %s642_s19 }
 0x1e6   :  { %v383_v50 = vsel %vm1256_vm10, %v381_v44, 0.0  ;;  %v390_v55 = vsel %vm1077_vm6, %v389_v42, 0.0  ;;  %v453_v44 = vstv %s720_s20  ;;  %s892_s20 = smov [#allocation10]  }
 0x1e7   :  { %v363_v47 = vadd.f32 %v362_v41, %v359_v40  ;;  %v385_v57 = vmul.f32 %v384_v49, %v383_v50  ;;  %v392_v61 = vmul.f32 %v391_v54, %v390_v55  ;;  %v461_v50 = vstv %s721_s21  ;;  %s651_s21 = sshll.u32 %s892_s20, 4  ;;  %s652_s21 = int_to_ptr.vmem [resolvable:$true] %s651_s21 }
 0x1e8   :  { %v473_v55 = vstv %s723_s23 }
 0x1e9   :  { %v370_v52 = vadd.f32 %v369_v48, %v363_v47  ;;  %v401_v53 = vpop.permute.xlu0 %400  ;;  %v408_v58 = vpop.permute.xlu1 %407  ;;  %v629_v2 = vstv %s750_s17 }
 0x1ea   :  { %v402_v1 = vsel %vm1091_vm7, %v401_v53, 0.0  ;;  %v410_v7 = vsel %vm1284_vm11, %v408_v58, 0.0 }
 0x1eb   :  { %v377_v56 = vadd.f32 %v376_v51, %v370_v52  ;;  %v404_v12 = vmul.f32 %v403_v0, %v402_v1  ;;  %v412_v18 = vmul.f32 %v411_v6, %v410_v7  ;;  %v466_v51 = vstv %s722_s22  ;;  %s830_s22 = scalar_lea.vmem %s642_s19, 128 }
 0x1ec   :  { %v484_v1 = vstv %s725_s25  ;;  %p831_p7 = scmp.ne.s32.totalorder %s642_s19, %s830_s22  ;;  %p836_p9 = scmp.lt.s32.totalorder %s830_s22, %s830_s22 }
 0x1ed   :  { %v386_v62 = vadd.f32 %v385_v57, %v377_v56  ;;  %v417_v5 = vpop.permute.xlu0 %416  ;;  %v425_v15 = vpop.permute.xlu1 %424 }
 0x1ee   :  { %v419_v17 = vsel %vm1298_vm14, %v417_v5, 0.0  ;;  %v427_v22 = vsel %vm1309_vm15, %v425_v15, 0.0  ;;  %v491_v5 = vstv %s726_s26  ;;  %p837_p10 = por %p836_p9, %p835_p8 }
 0x1ef   :  { %v393_v30 = vadd.f32 %v392_v61, %v386_v62  ;;  %v421_v24 = vmul.f32 %v420_v16, %v419_v17  ;;  %v429_v32 = vmul.f32 %v428_v21, %v427_v22  ;;  %v504_v21 = vstv %s728_s28 }
 0x1f0   :  { %p838_p11 = pnand %p837_p10, %p831_p7 }
 0x1f1   :  { %v398_v11 = vadd.f32 %v397_v3, %v393_v30  ;;  %v438_v26 = vpop.permute.xlu0 %437  ;;  %v446_v34 = vpop.permute.xlu1 %445 }
 0x1f2   :  { %v440_v36 = vsel %vm1323_vm8, %v438_v26, 0.0  ;;  %v448_v40 = vsel %vm447_vm9, %v446_v34, 0.0 }
 0x1f3   :  { %v405_v20 = vadd.f32 %v404_v12, %v398_v11  ;;  %v442_v31 = vmul.f32 %v441_v35, %v440_v36  ;;  %v450_v42 = vmul.f32 %v449_v39, %v448_v40  ;;  %v523_v36 = vstv %s732_s5 }
 0x1f4   :  { %v526_v39 = vstv %s733_s7  ;;  %v542_v40 = vstv %s736_s8 }
 0x1f5   :  { %v413_v23 = vadd.f32 %v412_v18, %v405_v20 }
 0x1f7   :  { %v422_v33 = vadd.f32 %v421_v24, %v413_v23  ;;  %v511_v24 = vstv %s729_s29 }
 0x1f9   :  { %v430_v37 = vadd.f32 %v429_v32, %v422_v33  ;;  %v515_v33 = vstv %s730_s30 }
 0x1fb   :  { %v435_v41 = vadd.f32 %v434_v38, %v430_v37  ;;  %v539_v37 = vstv %s735_s6 }
 0x1fd   :  { %v443_v43 = vadd.f32 %v442_v31, %v435_v41  ;;  %v555_v41 = vstv %s738_s9 }
 0x1ff   :  { %v451_v45 = vadd.f32 %v450_v42, %v443_v43 }
 0x201   :  { %v454_v46 = vadd.f32 %v453_v44, %v451_v45 }
 0x203   :  { %v455_v47 = vmax.f32 %v454_v46, 0.0  ;;  %v558_v46 = vstv %s739_s10 }
 0x205   :  { %v457_v48 = vrot.slane %v455_v47, 7  ;;  %v495_v49 = vrot.slane %v455_v47, 1  ;;  %v485_v7 = vmul.f32 %v484_v1, %v455_v47 }
 0x207   :  { %470 = vrot.lane.b32.xlu1 %v457_v48, %s887_s1  ;;  %458 = vrot.lane.b32.xlu0 %v457_v48, %s888_s2  ;;  %v465_v52 = vsel %vm74_vm0, %v457_v48, 0.0  ;;  %v503_v20 = vsel %vm73_vm5, %v495_v49, 0.0 }
 0x208   :  { %v467_v59 = vmul.f32 %v466_v51, %v465_v52  ;;  %v505_v26 = vmul.f32 %v504_v21, %v503_v20 }
 0x20b   :  { %488 = vrot.lane.b32.xlu1 %v455_v47, %s887_s1  ;;  %477 = vrot.lane.b32.xlu0 %v455_v47, %s888_s2 }
 0x20f   :  { %508 = vrot.lane.b32.xlu1 %v495_v49, %s887_s1  ;;  %496 = vrot.lane.b32.xlu0 %v495_v49, %s888_s2 }
 0x279   :  { %v471_v53 = vpop.permute.xlu1 %470  ;;  %v459_v54 = vpop.permute.xlu0 %458 }
 0x27a   :  { %v472_v56 = vsel %vm1014_vm4, %v471_v53, 0.0  ;;  %v460_v57 = vsel %vm1000_vm3, %v459_v54, 0.0  ;;  %v731_v54 = vadd.f32 -1.0, %v1123_v27 }
 0x27b   :  { %v462_v58 = vmul.f32 %v461_v50, %v460_v57  ;;  %v474_v61 = vmul.f32 %v473_v55, %v472_v56 }
 0x27c   :  { %v520_v56 = vmax.f32 %v731_v54, 0.0 }
 0x27d   :  { %v468_v62 = vadd.f32 %v467_v59, %v462_v58  ;;  %v489_v63 = vpop.permute.xlu1 %488  ;;  %v478_v0 = vpop.permute.xlu0 %477  ;;  %v518_v58 = vmax.f32 %v1123_v27, 0.0 }
 0x27e   :  { %v479_v30 = vsel %vm76_vm1, %v478_v0, 0.0  ;;  %v490_v6 = vsel %vm75_vm2, %v489_v63, 0.0 }
 0x27f   :  { %v475_v3 = vadd.f32 %v474_v61, %v468_v62  ;;  %v481_v4 = vmul.f32 %v480_v60, %v479_v30  ;;  %v492_v16 = vmul.f32 %v491_v5, %v490_v6  ;;  %v521_v59 = vsub.f32 %v518_v58, %v520_v56 }
 0x281   :  { %v482_v11 = vadd.f32 %v481_v4, %v475_v3  ;;  %v497_v12 = vpop.permute.xlu0 %496  ;;  %v509_v18 = vpop.permute.xlu1 %508  ;;  %v535_v63 = vsub.f32 1.0, %v521_v59 }
 0x282   :  { %v498_v15 = vsel %vm1077_vm6, %v497_v12, 0.0  ;;  %v510_v25 = vsel %vm1091_vm7, %v509_v18, 0.0  ;;  %v580_v18 = vstv %s742_s11 }
 0x283   :  { %v486_v17 = vadd.f32 %v485_v7, %v482_v11  ;;  %v500_v23 = vmul.f32 %v499_v13, %v498_v15  ;;  %v512_v29 = vmul.f32 %v511_v24, %v510_v25 }
 0x285   :  { %v493_v22 = vadd.f32 %v492_v16, %v486_v17  ;;  %v575_v17 = vstv %s741_s0 }
 0x287   :  { %v501_v28 = vadd.f32 %v500_v23, %v493_v22  ;;  %v587_v23 = vstv %s743_s12 }
 0x289   :  { %v506_v32 = vadd.f32 %v505_v26, %v501_v28 }
 0x28b   :  { %v513_v34 = vadd.f32 %v512_v29, %v506_v32  ;;  %v594_v29 = vstv %s744_s13 }
 0x28d   :  { %v516_v35 = vadd.f32 %v515_v33, %v513_v34 }
 0x28f   :  { %v517_v38 = vmax.f32 %v516_v35, 0.0 }
 0x291   :  { %v524_v31 = vmul.f32 %v523_v36, %v517_v38  ;;  %v540_v42 = vmul.f32 %v539_v37, %v517_v38  ;;  %v556_v45 = vmul.f32 %v555_v41, %v517_v38  ;;  %v598_v36 = vstv %s745_s14 }
 0x293   :  { %v527_v43 = vadd.f32 %v526_v39, %v524_v31  ;;  %v543_v44 = vadd.f32 %v542_v40, %v540_v42  ;;  %v559_v49 = vadd.f32 %v558_v46, %v556_v45  ;;  %v605_v39 = vstv %s746_s15 }
 0x295   :  { %v734_v47 = vmul.f32 -1.442695, %v527_v43  ;;  %v737_v48 = vmul.f32 -1.442695, %v543_v44  ;;  %v740_v50 = vmul.f32 -1.442695, %v559_v49 }
 0x297   :  { %760 = vpow2.f32 %v734_v47 }
 0x298   :  { %762 = vpow2.f32 %v737_v48 }
 0x299   :  { %764 = vpow2.f32 %v740_v50 }
 0x2a1   :  { %v761_v51 = vpop.eup %760 }
 0x2a2   :  { %v531_v52 = vadd.f32 1.0, %v761_v51  ;;  %v763_v53 = vpop.eup %762  ;;  %v625_v51 = vstv %s749_s16 }
 0x2a3   :  { %v547_v55 = vadd.f32 1.0, %v763_v53  ;;  %v765_v57 = vpop.eup %764 }
 0x2a4   :  { %766 = vrcp.f32 %v531_v52  ;;  %v563_v60 = vadd.f32 1.0, %v765_v57 }
 0x2a5   :  { %768 = vrcp.f32 %v547_v55 }
 0x2a6   :  { %770 = vrcp.f32 %v563_v60 }
 0x2ae   :  { %v767_v61 = vpop.eup %766 }
 0x2af   :  { %v534_v62 = vmul.f32 %v767_v61, %v521_v59  ;;  %v769_v30 = vpop.eup %768 }
 0x2b0   :  { %v771_v7 = vpop.eup %770 }
 0x2b1   :  { %v536_v0 = vmul.f32 %v535_v63, %v534_v62 }
 0x2b3   :  { %v537_v1 = vadd.f32 %v536_v0, %v521_v59  ;;  %v773_v59 = vld [vmem:[#allocation6] sm:$0xff] }
 0x2b5   :  { %v550_v3 = vmul.f32 %v769_v30, %v537_v1  ;;  %v551_v4 = vsub.f32 1.0, %v537_v1 }
 0x2b7   :  { %v552_v5 = vmul.f32 %v551_v4, %v550_v3 }
 0x2b9   :  { %v553_v6 = vadd.f32 %v552_v5, %v537_v1 }
 0x2bb   :  { %v566_v11 = vmul.f32 %v771_v7, %v553_v6  ;;  %v567_v12 = vsub.f32 1.0, %v553_v6 }
 0x2bd   :  { %v568_v13 = vmul.f32 %v567_v12, %v566_v11 }
 0x2bf   :  { %v569_v15 = vadd.f32 %v568_v13, %v553_v6 }
 0x2c1   :  { %v571_v27 = vrot.slane %v569_v15, 7  ;;  %v609_v16 = vrot.slane %v569_v15, 1  ;;  %v599_v40 = vmul.f32 %v598_v36, %v569_v15 }
 0x2c3   :  { %584 = vrot.lane.b32.xlu1 %v571_v27, %s887_s1  ;;  %572 = vrot.lane.b32.xlu0 %v571_v27, %s888_s2  ;;  %v579_v20 = vsel %vm74_vm0, %v571_v27, 0.0  ;;  %v617_v47 = vsel %vm73_vm5, %v609_v16, 0.0 }
 0x2c4   :  { %v581_v28 = vmul.f32 %v580_v18, %v579_v20 }
 0x2c7   :  { %602 = vrot.lane.b32.xlu1 %v569_v15, %s887_s1  ;;  %591 = vrot.lane.b32.xlu0 %v569_v15, %s888_s2 }
 0x2cb   :  { %622 = vrot.lane.b32.xlu1 %v609_v16, %s887_s1  ;;  %610 = vrot.lane.b32.xlu0 %v609_v16, %s888_s2  ;;  %s747_s1 = sld [smem:[#allocation8 + $0x4e]]  ;;  %s748_s2 = sld [smem:[#allocation8 + $0x4f]] }
 0x2d1   :  { %v613_v42 = vstv %s747_s1  ;;  %v618_v48 = vstv %s748_s2 }
 0x2d2   :  { %v619_v52 = vmul.f32 %v618_v48, %v617_v47 }
 0x335   :  { %v585_v21 = vpop.permute.xlu1 %584  ;;  %v573_v22 = vpop.permute.xlu0 %572 }
 0x336   :  { %v586_v24 = vsel %vm1014_vm4, %v585_v21, 0.0  ;;  %v574_v25 = vsel %vm1000_vm3, %v573_v22, 0.0 }
 0x337   :  { %v576_v26 = vmul.f32 %v575_v17, %v574_v25  ;;  %v588_v32 = vmul.f32 %v587_v23, %v586_v24 }
 0x339   :  { %v582_v33 = vadd.f32 %v581_v28, %v576_v26  ;;  %v603_v34 = vpop.permute.xlu1 %602  ;;  %v592_v35 = vpop.permute.xlu0 %591 }
 0x33a   :  { %v593_v37 = vsel %vm76_vm1, %v592_v35, 0.0  ;;  %v604_v10 = vsel %vm75_vm2, %v603_v34, 0.0 }
 0x33b   :  { %v589_v38 = vadd.f32 %v588_v32, %v582_v33  ;;  %v595_v14 = vmul.f32 %v594_v29, %v593_v37  ;;  %v606_v44 = vmul.f32 %v605_v39, %v604_v10 }
 0x33d   :  { %v596_v41 = vadd.f32 %v595_v14, %v589_v38  ;;  %v611_v31 = vpop.permute.xlu0 %610  ;;  %v623_v46 = vpop.permute.xlu1 %622 }
 0x33e   :  { %v612_v43 = vsel %vm1077_vm6, %v611_v31, 0.0  ;;  %v624_v9 = vsel %vm1091_vm7, %v623_v46, 0.0 }
 0x33f   :  { %v600_v45 = vadd.f32 %v599_v40, %v596_v41  ;;  %v614_v50 = vmul.f32 %v613_v42, %v612_v43  ;;  %v626_v54 = vmul.f32 %v625_v51, %v624_v9 }
 0x341   :  { %v607_v49 = vadd.f32 %v606_v44, %v600_v45 }
 0x343   :  { %v615_v53 = vadd.f32 %v614_v50, %v607_v49 }
 0x345   :  { %v620_v55 = vadd.f32 %v619_v52, %v615_v53 }
 0x347   :  { %v627_v56 = vadd.f32 %v626_v54, %v620_v55 }
 0x349   :  { %v630_v57 = vadd.f32 %v629_v2, %v627_v56 }
 0x34b   :  { %v631_v58 = vadd.f32 %v772_v8, %v630_v57  ;;  %v633_v60 = vadd.f32 %v773_v59, %v630_v57 }
 0x34d   :  { %632 = vst [vmem:[#allocation9] sm:$0xff] %v631_v58  ;;  %634 = vst [vmem:[#allocation10] sm:$0xff] %v633_v60 }
 0x34e   :  { %841 = shalt.err (!%p838_p11)
}
 0x34f   :  { %s842_s25 = scalar_lea.hbm %s1410_s3, 128 }
 0x350   :  { %p843_p12 = scmp.ne.s32.totalorder %s1410_s3, %s842_s25  ;;  %p846_p13 = scmp.lt.u32.totalorder %s842_s25, %s1410_s3 }
 0x352   :  { %p848_p0 = pnand %p846_p13, %p843_p12 }
 0x354   :  { %851 = shalt.err (!%p848_p0)
}
 0x355   :  { %644 = dma.vmem_to_hbm [thread:$0]  %s642_s19, 128, %s1410_s3, [#allocation4]  }
 0x356   :  { %s852_s6 = scalar_lea.vmem %s652_s21, 128  ;;  %p857_p2 = scmp.lt.s32.totalorder %s652_s21, %s652_s21 }
 0x357   :  { %p853_p1 = scmp.ne.s32.totalorder %s652_s21, %s852_s6  ;;  %p858_p3 = scmp.lt.s32.totalorder %s852_s6, %s852_s6 }
 0x359   :  { %p859_p4 = por %p858_p3, %p857_p2 }
 0x35b   :  { %p860_p5 = pnand %p859_p4, %p853_p1 }
 0x35d   :  { %863 = shalt.err (!%p860_p5)
}
 0x35e   :  { %s864_s9 = scalar_lea.hbm %s1411_s4, 128 }
 0x35f   :  { %p865_p6 = scmp.ne.s32.totalorder %s1411_s4, %s864_s9  ;;  %p868_p7 = scmp.lt.u32.totalorder %s864_s9, %s1411_s4 }
 0x361   :  { %p870_p8 = pnand %p868_p7, %p865_p6 }
 0x363   :  { %873 = shalt.err (!%p870_p8)
}
 0x364   :  { %654 = dma.vmem_to_hbm [thread:$0]  %s652_s21, 128, %s1411_s4, [#allocation11]  }
 0x365   :  { %880 = dma.done.wait [#allocation4], 128  }
 0x366   :  { %881 = vsyncadd [#allocation4], 4294967168 }
 0x367   :  { %882 = dma.done.wait [#allocation11], 128  }
 0x368   :  { %883 = vsyncadd [#allocation11], 4294967168 }
 0x369   :  { %661 = vsyncpa [#allocation3], 1 }
 0x36a   :  { %662 = vsyncpa [#allocation7], 1 }
 0x36b   :  { %663 = vsyncpa [#allocation4], 1 }
 0x36c   :  { %664 = vsyncpa [#allocation11], 1 }
 0x36d   :  { %665 = vsyncpa [#allocation5], 1 }

</bundles_post_ra>
